<compile_context>
chip_gen: v5e
topology: v5e:2x2
jax: 0.10.0
libtpu: 0.0.40
codegen_flags: <defaults>
</compile_context>

<pallas_src>
import jax
import jax.numpy as jnp
import numpy as np
from jax import lax
from jax.experimental import pallas as pl
from jax.experimental.pallas import tpu as pltpu

EPS = 1e-5


def _round_up(x, m):
    return ((x + m - 1) // m) * m


def _vmem_budget_bytes():
    """Generation-aware usable VMEM (v7x: 64 MiB phys -> ~48 MiB; v5e/v6e: ~96 MiB)."""
    try:
        cap = int(pltpu.get_tpu_info().vmem_capacity_bytes)
    except Exception:
        cap = 64 << 20                       # conservative (v7x-sized) default
    return int(min(cap * 3 // 4, 100 << 20))


def _tap_matmul(x_win, w_ref, shifts, tile_m):
    """y (C_out, tile_m) f32 = sum_t W_t @ x_win[:, shift_t : shift_t + tile_m]."""
    y = None
    for t, sh in enumerate(shifts):
        xt = x_win[:, sh:sh + tile_m]                        # static lane shift in VMEM
        d = jnp.dot(w_ref[t], xt, preferred_element_type=jnp.float32)
        y = d if y is None else y + d
    return y


def _make_resident_kernel(shifts, tile_m, tile_x, n_tiles, inv_m):
    """Single pass: y tiles land in the VMEM-resident output block, BN stats
    accumulate in scratch, fused scale/shift+ReLU runs once at the last tile."""

    def kernel(xf_ref, w_ref, prm_ref, mask_ref, o_ref, buf, sem, sum_sc, sq_sc):
        i = pl.program_id(0)
        n = pl.num_programs(0)

        def dma(win, slot):
            return pltpu.make_async_copy(
                xf_ref.at[:, pl.ds(win * tile_m, tile_x)], buf.at[slot], sem.at[slot])

        @pl.when(i == 0)
        def _prime():
            sum_sc[...] = jnp.zeros_like(sum_sc)
            sq_sc[...] = jnp.zeros_like(sq_sc)
            dma(i, 0).start()                                # i == 0 here

        @pl.when(i + 1 < n)
        def _prefetch():
            dma(i + 1, (i + 1) % 2).start()

        slot = i % 2
        dma(i, slot).wait()

        y = _tap_matmul(buf[slot], w_ref, shifts, tile_m)    # (C_out, tile_m) f32
        o_ref[:, pl.ds(pl.multiple_of(i * tile_m, 128), tile_m)] = y

        yv = y * mask_ref[...]                               # drop padded-grid columns
        sum_sc[...] += jnp.sum(yv, axis=1, keepdims=True)
        sq_sc[...] += jnp.sum(yv * yv, axis=1, keepdims=True)

        @pl.when(i == n - 1)
        def _finalize():
            gamma = prm_ref[:, 0:1]
            beta = prm_ref[:, 1:2]
            mean = sum_sc[...] * inv_m
            var = jnp.maximum(sq_sc[...] * inv_m - mean * mean, 0.0)
            scale = gamma * lax.rsqrt(var + EPS)             # EUP slot
            shift = beta - mean * scale

            def body(t, carry):                              # tile-sized temporaries only
                start = pl.multiple_of(t * tile_m, 128)
                blk = o_ref[:, pl.ds(start, tile_m)]
                o_ref[:, pl.ds(start, tile_m)] = jnp.maximum(blk * scale + shift, 0.0)
                return carry

            lax.fori_loop(0, n_tiles, body, 0)

    return kernel


def _make_streaming_kernel(shifts, tile_m, tile_x, inv_m):
    """Two phases over the tile axis: phase 0 = statistics only (no output
    writeback), phase 1 = recompute the tile + fused scale/shift + ReLU."""

    def kernel(xf_ref, w_ref, prm_ref, mask_ref, o_ref, buf, sem,
               sum_sc, sq_sc, scale_sc, shift_sc):
        ph = pl.program_id(0)
        i = pl.program_id(1)
        n = pl.num_programs(1)
        g = ph * n + i                                       # global step over both phases

        def dma(win, slot):
            return pltpu.make_async_copy(
                xf_ref.at[:, pl.ds(win * tile_m, tile_x)], buf.at[slot], sem.at[slot])

        @pl.when(g == 0)
        def _prime():
            sum_sc[...] = jnp.zeros_like(sum_sc)
            sq_sc[...] = jnp.zeros_like(sq_sc)
            dma(i, 0).start()                                # window 0

        @pl.when(g + 1 < 2 * n)
        def _prefetch():
            dma((g + 1) % n, (g + 1) % 2).start()

        slot = g % 2
        dma(i, slot).wait()

        y = _tap_matmul(buf[slot], w_ref, shifts, tile_m)    # (C_out, tile_m) f32

        @pl.when(ph == 0)
        def _stats():
            yv = y * mask_ref[...]
            sum_sc[...] += jnp.sum(yv, axis=1, keepdims=True)
            sq_sc[...] += jnp.sum(yv * yv, axis=1, keepdims=True)

        @pl.when(jnp.logical_and(ph == 0, i == n - 1))
        def _finalize():
            gamma = prm_ref[:, 0:1]
            beta = prm_ref[:, 1:2]
            mean = sum_sc[...] * inv_m
            var = jnp.maximum(sq_sc[...] * inv_m - mean * mean, 0.0)
            scale = gamma * lax.rsqrt(var + EPS)
            scale_sc[...] = scale
            shift_sc[...] = beta - mean * scale

        @pl.when(ph == 1)
        def _normalize():
            o_ref[...] = jnp.maximum(y * scale_sc[...] + shift_sc[...], 0.0)

    return kernel


def conv2d_batchnorm_relu(x_nchw, w_oihw, bias, gamma, beta, *,
                          stride=1, padding=1, dilation=1,
                          tile_m=None, force_streaming=False):
    """Forward of conv2DBatchNormRelu(is_batchnorm=True): Conv2d -> BN(train) -> ReLU.

    The conv bias is accepted for API parity but is cancelled exactly by the
    batch-statistics BatchNorm, so it is not used.
    """
    if stride != 1:
        # TODO(synk): stride > 1 needs a strided tap gather; not implemented.
        raise NotImplementedError("Pallas conv2DBatchNormRelu supports stride=1 only")
    del bias

    N, C_in, H, W = x_nchw.shape
    C_out, _, KH, KW = w_oihw.shape
    Hp, Wp = H + 2 * padding, W + 2 * padding
    H_out = Hp - dilation * (KH - 1)
    W_out = Wp - dilation * (KW - 1)
    M_valid = N * H_out * W_out                  # real output positions (BN count)
    Me = N * Hp * Wp                             # extended (padded-grid) columns
    halo = dilation * ((KH - 1) * Wp + (KW - 1))
    C_in_pad = _round_up(max(C_in, 1), 8)
    T = KH * KW

    budget = _vmem_budget_bytes()

    # --- tile size: big lane-dense tiles, clamped to the problem & VMEM budget ---
    if tile_m is None:
        tile_m = 4096
    tile_m = _round_up(min(tile_m, _round_up(Me, 128)), 128)

    def stream_bytes(tm):
        tx = _round_up(tm + halo, 128)
        return (2 * C_in_pad * tx * 2            # double-buffered input windows (bf16)
                + 2 * C_out * tm * 4             # double-buffered output tiles (f32)
                + 2 * tm * 4                     # double-buffered mask tiles
                + T * C_out * C_in_pad * 2 + (64 << 10))

    while tile_m > 128 and stream_bytes(tile_m) > budget:
        tile_m -= 128

    Me_pad = _round_up(Me, tile_m)
    n_tiles = Me_pad // tile_m
    tile_x = _round_up(tile_m + halo, 128)
    X_pad = (n_tiles - 1) * tile_m + tile_x

    resident_bytes = (C_out * Me_pad * 4 + 2 * C_in_pad * tile_x * 2
                      + 2 * tile_m * 4 + T * C_out * C_in_pad * 2 + (64 << 10))
    use_resident = (not force_streaming) and resident_bytes <= budget

    # --- operands (no im2col: just the zero-padded input, flattened, bf16) ---
    xb = x_nchw.astype(jnp.bfloat16)
    x_pad = jnp.pad(xb, ((0, 0), (0, C_in_pad - C_in),
                         (padding, padding), (padding, padding)))
    xf = jnp.transpose(x_pad, (1, 0, 2, 3)).reshape(C_in_pad, Me)
    xf = jnp.pad(xf, ((0, 0), (0, X_pad - Me)))

    w_taps = jnp.transpose(w_oihw, (2, 3, 0, 1)).reshape(T, C_out, C_in)
    w_taps = jnp.pad(w_taps, ((0, 0), (0, 0), (0, C_in_pad - C_in))).astype(jnp.bfloat16)

    mask = jnp.pad(jnp.ones((N, H_out, W_out), jnp.float32),
                   ((0, 0), (0, Hp - H_out), (0, Wp - W_out))).reshape(1, Me)
    mask = jnp.pad(mask, ((0, 0), (0, Me_pad - Me)))

    prm = jnp.stack([gamma, beta], axis=1).astype(jnp.float32)       # (C_out, 2)

    shifts = tuple(dilation * (kh * Wp + kw) for kh in range(KH) for kw in range(KW))
    inv_m = 1.0 / float(M_valid)

    common_scratch = [
        pltpu.VMEM((2, C_in_pad, tile_x), jnp.bfloat16),   # double-buffered halo windows
        pltpu.SemaphoreType.DMA((2,)),
        pltpu.VMEM((C_out, 1), jnp.float32),               # per-channel sum
        pltpu.VMEM((C_out, 1), jnp.float32),               # per-channel sum of squares
    ]

    if use_resident:
        kernel = _make_resident_kernel(shifts, tile_m, tile_x, n_tiles, inv_m)
        grid = (n_tiles,)
        in_specs = [
            pl.BlockSpec(memory_space=pl.ANY),                          # xf: manual DMA
            pl.BlockSpec((T, C_out, C_in_pad), lambda i: (0, 0, 0)),    # weights (resident)
            pl.BlockSpec((C_out, 2), lambda i: (0, 0)),                 # gamma/beta
            pl.BlockSpec((1, tile_m), lambda i: (0, i)),                # stats mask
        ]
        out_specs = pl.BlockSpec((C_out, Me_pad), lambda i: (0, 0))     # VMEM-resident out
        scratch = common_scratch
        semantics = ("arbitrary",)
        n_passes = 1
    else:
        kernel = _make_streaming_kernel(shifts, tile_m, tile_x, inv_m)
        grid = (2, n_tiles)
        in_specs = [
            pl.BlockSpec(memory_space=pl.ANY),
            pl.BlockSpec((T, C_out, C_in_pad), lambda ph, i: (0, 0, 0)),
            pl.BlockSpec((C_out, 2), lambda ph, i: (0, 0)),
            pl.BlockSpec((1, tile_m), lambda ph, i: (0, i)),
        ]
        # Phase 0 pins the output index to block 0 (never written) so no
        # stat-pass garbage is flushed to HBM; phase 1 streams the real tiles.
        out_specs = pl.BlockSpec((C_out, tile_m), lambda ph, i: (0, ph * i))
        scratch = common_scratch + [
            pltpu.VMEM((C_out, 1), jnp.float32),            # BN scale
            pltpu.VMEM((C_out, 1), jnp.float32),            # BN shift
        ]
        semantics = ("arbitrary", "arbitrary")
        n_passes = 2

    out_ext = pl.pallas_call(
        kernel,
        out_shape=jax.ShapeDtypeStruct((C_out, Me_pad), jnp.float32),
        grid_spec=pltpu.PrefetchScalarGridSpec(
            num_scalar_prefetch=0,
            grid=grid,
            in_specs=in_specs,
            out_specs=out_specs,
            scratch_shapes=scratch,
        ),
        compiler_params=pltpu.CompilerParams(
            dimension_semantics=semantics,
            vmem_limit_bytes=budget,
        ),
        cost_estimate=pl.CostEstimate(
            flops=int(2 * T * C_out * C_in_pad * Me_pad * n_passes),
            transcendentals=int(C_out),
            bytes_accessed=int(xf.size * 2 * n_passes + C_out * Me_pad * 4
                               + mask.size * 4),
        ),
    )(xf, w_taps, prm, mask)

    out = out_ext[:, :Me].reshape(C_out, N, Hp, Wp)[:, :, :H_out, :W_out]
    return jnp.transpose(out, (1, 0, 2, 3))


def _reference(x, w, b, gamma, beta, *, stride=1, padding=1, dilation=1):
    """Pure-JAX f32 reference (conv + bias, batch-stat BN, ReLU) for validation."""
    y = lax.conv_general_dilated(
        x, w, window_strides=(stride, stride),
        padding=((padding, padding), (padding, padding)),
        rhs_dilation=(dilation, dilation),
        dimension_numbers=("NCHW", "OIHW", "NCHW"),
    ) + b.reshape(1, -1, 1, 1)
    mean = y.mean(axis=(0, 2, 3), keepdims=True)
    var = ((y - mean) ** 2).mean(axis=(0, 2, 3), keepdims=True)   # biased, BN training
    y_bn = (y - mean) * lax.rsqrt(var + EPS) * gamma.reshape(1, -1, 1, 1) \
        + beta.reshape(1, -1, 1, 1)
    return jnp.maximum(y_bn, 0.0)


if __name__ == "__main__":
    # conv2DBatchNormRelu(in_channels=4, n_filters=8, k_size=3, stride=1,
    #                     padding=1, bias=True, dilation=1, is_batchnorm=True)
    N, C_in, H, W = 2, 4, 16, 16
    C_out, KH, KW = 8, 3, 3

    key = jax.random.PRNGKey(0)
    kx, kw_, kb, kg, kbeta = jax.random.split(key, 5)
    x = jax.random.normal(kx, (N, C_in, H, W), dtype=jnp.float32)
    w = jax.random.normal(kw_, (C_out, C_in, KH, KW), dtype=jnp.float32) * 0.1
    b = jax.random.normal(kb, (C_out,), dtype=jnp.float32) * 0.1
    gamma = 1.0 + 0.1 * jax.random.normal(kg, (C_out,), dtype=jnp.float32)
    beta = 0.1 * jax.random.normal(kbeta, (C_out,), dtype=jnp.float32)

    ref = jax.block_until_ready(_reference(x, w, b, gamma, beta, stride=1, padding=1))

    # 1) default path: single-pass, VMEM-resident output, one big tile.
    out = jax.block_until_ready(conv2d_batchnorm_relu(x, w, b, gamma, beta))
    np.testing.assert_allclose(np.asarray(out), np.asarray(ref), rtol=3e-2, atol=3e-2)

    # 2) multi-tile single-pass: exercises double-buffered halo DMA + cross-tile stats.
    out = jax.block_until_ready(conv2d_batchnorm_relu(x, w, b, gamma, beta, tile_m=128))
    np.testing.assert_allclose(np.asarray(out), np.asarray(ref), rtol=3e-2, atol=3e-2)

    # 3) streaming two-phase fallback (used when the output exceeds the VMEM budget).
    out = jax.block_until_ready(
        conv2d_batchnorm_relu(x, w, b, gamma, beta, tile_m=128, force_streaming=True))
    np.testing.assert_allclose(np.asarray(out), np.asarray(ref), rtol=3e-2, atol=3e-2)

    print("KERNEL_OK")
</pallas_src>

<mosaic_0001>
module attributes {stable_mosaic.version = 11 : i64} {
  func.func @kernel(%arg0: i32, %arg1: memref<8x896xbf16, #tpu.memory_space<any>>, %arg2: memref<9x8x8xbf16, #tpu.memory_space<vmem>>, %arg3: memref<8x2xf32, #tpu.memory_space<vmem>>, %arg4: memref<1x768xf32, #tpu.memory_space<vmem>>, %arg5: memref<8x768xf32, #tpu.memory_space<vmem>>, %arg6: memref<2x8x896xbf16, #tpu.memory_space<vmem>>, %arg7: memref<2x!tpu.dma_semaphore, #tpu.memory_space<semaphore_mem>>, %arg8: memref<8x1xf32, #tpu.memory_space<vmem>>, %arg9: memref<8x1xf32, #tpu.memory_space<vmem>>) attributes {dimension_semantics = [#tpu.dimension_semantics<arbitrary>], iteration_bounds = array<i64: 1>, scalar_prefetch = 0 : i64, scratch_operands = 4 : i64, tpu.core_type = #tpu.core_type<tc>, window_params = [{}, {pipeline_mode = #tpu.pipeline_mode<synchronous>, transform_indices = @transform_1, window_bounds = array<i64: 9, 8, 8>}, {pipeline_mode = #tpu.pipeline_mode<synchronous>, transform_indices = @transform_2, window_bounds = array<i64: 8, 2>}, {transform_indices = @transform_3, window_bounds = array<i64: 1, 768>}, {pipeline_mode = #tpu.pipeline_mode<synchronous>, transform_indices = @transform_4, window_bounds = array<i64: 8, 768>}]} {
    %c0_i32 = arith.constant 0 : i32
    %0 = arith.cmpi eq, %arg0, %c0_i32 : i32
    %1 = arith.extui %0 : i1 to i32
    %c0_i32_0 = arith.constant 0 : i32
    %2 = arith.cmpi ne, %1, %c0_i32_0 : i32
    scf.if %2 {
      %cst_55 = arith.constant 0.000000e+00 : f32
      %91 = vector.broadcast %cst_55 : f32 to vector<8x1xf32>
      %c0_56 = arith.constant 0 : index
      %c0_57 = arith.constant 0 : index
      %92 = vector.load %arg8[%c0_56, %c0_57] : memref<8x1xf32, #tpu.memory_space<vmem>>, vector<8x1xf32>
      tpu.vector_store %arg8[%c0_56, %c0_57], %91 {strides = array<i32>} : memref<8x1xf32, #tpu.memory_space<vmem>>, vector<8x1xf32>,
      %cst_58 = arith.constant 0.000000e+00 : f32
      %93 = vector.broadcast %cst_58 : f32 to vector<8x1xf32>
      %c0_59 = arith.constant 0 : index
      %c0_60 = arith.constant 0 : index
      %94 = vector.load %arg9[%c0_59, %c0_60] : memref<8x1xf32, #tpu.memory_space<vmem>>, vector<8x1xf32>
      tpu.vector_store %arg9[%c0_59, %c0_60], %93 {strides = array<i32>} : memref<8x1xf32, #tpu.memory_space<vmem>>, vector<8x1xf32>,
      %c768_i32_61 = arith.constant 768 : i32
      %95 = arith.muli %arg0, %c768_i32_61 : i32
      %c0_i32_62 = arith.constant 0 : i32
      %c0_i32_63 = arith.constant 0 : i32
      %c0_i32_64 = arith.constant 0 : i32
      %96 = tpu.memref_slice %arg1[%c0_i32_64, %95] : memref<8x896xbf16, #tpu.memory_space<any>> -> memref<8x896xbf16, #tpu.memory_space<any>>
      %c0_i32_65 = arith.constant 0 : i32
      %c0_i32_66 = arith.constant 0 : i32
      %97 = tpu.memref_slice %arg6[%c0_i32_62, %c0_i32_65, %c0_i32_66] : memref<2x8x896xbf16, #tpu.memory_space<vmem>> -> memref<1x8x896xbf16, #tpu.memory_space<vmem>>
      %98 = tpu.memref_squeeze %97 : memref<1x8x896xbf16, #tpu.memory_space<vmem>> -> memref<8x896xbf16, #tpu.memory_space<vmem>>
      %99 = tpu.memref_slice %arg7[%c0_i32_63] : memref<2x!tpu.dma_semaphore, #tpu.memory_space<semaphore_mem>> -> memref<1x!tpu.dma_semaphore, #tpu.memory_space<semaphore_mem>>
      %100 = tpu.memref_squeeze %99 : memref<1x!tpu.dma_semaphore, #tpu.memory_space<semaphore_mem>> -> memref<!tpu.dma_semaphore, #tpu.memory_space<semaphore_mem>>
      tpu.enqueue_dma source(%96 : memref<8x896xbf16, #tpu.memory_space<any>>) target(%98 : memref<8x896xbf16, #tpu.memory_space<vmem>>) target_semaphore(%100 : memref<!tpu.dma_semaphore, #tpu.memory_space<semaphore_mem>>)
    } else {
    }
    %c1_i32 = arith.constant 1 : i32
    %3 = arith.addi %arg0, %c1_i32 : i32
    %c1_i32_1 = arith.constant 1 : i32
    %4 = arith.cmpi slt, %3, %c1_i32_1 : i32
    %5 = arith.extui %4 : i1 to i32
    %c0_i32_2 = arith.constant 0 : i32
    %6 = arith.cmpi ne, %5, %c0_i32_2 : i32
    scf.if %6 {
      %c1_i32_55 = arith.constant 1 : i32
      %91 = arith.addi %arg0, %c1_i32_55 : i32
      %c1_i32_56 = arith.constant 1 : i32
      %92 = arith.addi %arg0, %c1_i32_56 : i32
      %c2_i32_57 = arith.constant 2 : i32
      %c0_i32_58 = arith.constant 0 : i32
      %93 = arith.cmpi eq, %c2_i32_57, %c0_i32_58 : i32
      %c1_i32_59 = arith.constant 1 : i32
      %94 = arith.select %93, %c1_i32_59, %c2_i32_57 : i32
      %95 = arith.remsi %92, %94 : i32
      %c0_i32_60 = arith.constant 0 : i32
      %96 = arith.cmpi ne, %95, %c0_i32_60 : i32
      %c0_i32_61 = arith.constant 0 : i32
      %97 = arith.cmpi slt, %95, %c0_i32_61 : i32
      %c0_i32_62 = arith.constant 0 : i32
      %98 = arith.cmpi slt, %94, %c0_i32_62 : i32
      %99 = arith.xori %97, %98 : i1
      %100 = arith.andi %99, %96 : i1
      %101 = arith.addi %95, %94 : i32
      %102 = arith.select %100, %101, %95 : i32
      %c768_i32_63 = arith.constant 768 : i32
      %103 = arith.muli %91, %c768_i32_63 : i32
      %c0_i32_64 = arith.constant 0 : i32
      %104 = tpu.memref_slice %arg1[%c0_i32_64, %103] : memref<8x896xbf16, #tpu.memory_space<any>> -> memref<8x896xbf16, #tpu.memory_space<any>>
      %c0_i32_65 = arith.constant 0 : i32
      %c0_i32_66 = arith.constant 0 : i32
      %105 = tpu.memref_slice %arg6[%102, %c0_i32_65, %c0_i32_66] : memref<2x8x896xbf16, #tpu.memory_space<vmem>> -> memref<1x8x896xbf16, #tpu.memory_space<vmem>>
      %106 = tpu.memref_squeeze %105 : memref<1x8x896xbf16, #tpu.memory_space<vmem>> -> memref<8x896xbf16, #tpu.memory_space<vmem>>
      %107 = tpu.memref_slice %arg7[%102] : memref<2x!tpu.dma_semaphore, #tpu.memory_space<semaphore_mem>> -> memref<1x!tpu.dma_semaphore, #tpu.memory_space<semaphore_mem>>
      %108 = tpu.memref_squeeze %107 : memref<1x!tpu.dma_semaphore, #tpu.memory_space<semaphore_mem>> -> memref<!tpu.dma_semaphore, #tpu.memory_space<semaphore_mem>>
      tpu.enqueue_dma source(%104 : memref<8x896xbf16, #tpu.memory_space<any>>) target(%106 : memref<8x896xbf16, #tpu.memory_space<vmem>>) target_semaphore(%108 : memref<!tpu.dma_semaphore, #tpu.memory_space<semaphore_mem>>)
    } else {
    }
    %c2_i32 = arith.constant 2 : i32
    %c0_i32_3 = arith.constant 0 : i32
    %7 = arith.cmpi eq, %c2_i32, %c0_i32_3 : i32
    %c1_i32_4 = arith.constant 1 : i32
    %8 = arith.select %7, %c1_i32_4, %c2_i32 : i32
    %9 = arith.remsi %arg0, %8 : i32
    %c0_i32_5 = arith.constant 0 : i32
    %10 = arith.cmpi ne, %9, %c0_i32_5 : i32
    %c0_i32_6 = arith.constant 0 : i32
    %11 = arith.cmpi slt, %9, %c0_i32_6 : i32
    %c0_i32_7 = arith.constant 0 : i32
    %12 = arith.cmpi slt, %8, %c0_i32_7 : i32
    %13 = arith.xori %11, %12 : i1
    %14 = arith.andi %13, %10 : i1
    %15 = arith.addi %9, %8 : i32
    %16 = arith.select %14, %15, %9 : i32
    %c768_i32 = arith.constant 768 : i32
    %17 = arith.muli %arg0, %c768_i32 : i32
    %c0_i32_8 = arith.constant 0 : i32
    %18 = tpu.memref_slice %arg1[%c0_i32_8, %17] : memref<8x896xbf16, #tpu.memory_space<any>> -> memref<8x896xbf16, #tpu.memory_space<any>>
    %c0_i32_9 = arith.constant 0 : i32
    %c0_i32_10 = arith.constant 0 : i32
    %19 = tpu.memref_slice %arg6[%16, %c0_i32_9, %c0_i32_10] : memref<2x8x896xbf16, #tpu.memory_space<vmem>> -> memref<1x8x896xbf16, #tpu.memory_space<vmem>>
    %20 = tpu.memref_squeeze %19 : memref<1x8x896xbf16, #tpu.memory_space<vmem>> -> memref<8x896xbf16, #tpu.memory_space<vmem>>
    %21 = tpu.memref_slice %arg7[%16] : memref<2x!tpu.dma_semaphore, #tpu.memory_space<semaphore_mem>> -> memref<1x!tpu.dma_semaphore, #tpu.memory_space<semaphore_mem>>
    %22 = tpu.memref_squeeze %21 : memref<1x!tpu.dma_semaphore, #tpu.memory_space<semaphore_mem>> -> memref<!tpu.dma_semaphore, #tpu.memory_space<semaphore_mem>>
    tpu.wait_dma2 semaphore(%22 : memref<!tpu.dma_semaphore, #tpu.memory_space<semaphore_mem>>) src(%18 : memref<8x896xbf16, #tpu.memory_space<any>>) dst(%20 : memref<8x896xbf16, #tpu.memory_space<vmem>>)
    %23 = arith.index_cast %16 : i32 to index
    %c0 = arith.constant 0 : index
    %c0_11 = arith.constant 0 : index
    %24 = vector.load %arg6[%23, %c0, %c0_11] : memref<2x8x896xbf16, #tpu.memory_space<vmem>>, vector<1x8x896xbf16>
    %25 = vector.shape_cast %24 : vector<1x8x896xbf16> to vector<8x896xbf16>
    %26 = vector.extract_strided_slice %25 {offsets = [0, 0], sizes = [8, 768], strides = [1, 1]} : vector<8x896xbf16> to vector<8x768xbf16>
    %c0_12 = arith.constant 0 : index
    %c0_13 = arith.constant 0 : index
    %c0_14 = arith.constant 0 : index
    %27 = vector.load %arg2[%c0_12, %c0_13, %c0_14] : memref<9x8x8xbf16, #tpu.memory_space<vmem>>, vector<1x8x8xbf16>
    %28 = vector.shape_cast %27 : vector<1x8x8xbf16> to vector<8x8xbf16>
    %cst = arith.constant dense<0.000000e+00> : vector<8x768xf32>
    %29 = tpu.matmul %28, %26, %cst {dimension_numbers = #tpu.dot_dimension_numbers<[1], [0], [0], [1], [0, 0, 1, 1], [], []>} : vector<8x8xbf16>, vector<8x768xbf16>, vector<8x768xf32> -> vector<8x768xf32>
    %30 = vector.extract_strided_slice %25 {offsets = [0, 1], sizes = [8, 768], strides = [1, 1]} : vector<8x896xbf16> to vector<8x768xbf16>
    %c1 = arith.constant 1 : index
    %c0_15 = arith.constant 0 : index
    %c0_16 = arith.constant 0 : index
    %31 = vector.load %arg2[%c1, %c0_15, %c0_16] : memref<9x8x8xbf16, #tpu.memory_space<vmem>>, vector<1x8x8xbf16>
    %32 = vector.shape_cast %31 : vector<1x8x8xbf16> to vector<8x8xbf16>
    %cst_17 = arith.constant dense<0.000000e+00> : vector<8x768xf32>
    %33 = tpu.matmul %32, %30, %cst_17 {dimension_numbers = #tpu.dot_dimension_numbers<[1], [0], [0], [1], [0, 0, 1, 1], [], []>} : vector<8x8xbf16>, vector<8x768xbf16>, vector<8x768xf32> -> vector<8x768xf32>
    %34 = arith.addf %29, %33 : vector<8x768xf32>
    %35 = vector.extract_strided_slice %25 {offsets = [0, 2], sizes = [8, 768], strides = [1, 1]} : vector<8x896xbf16> to vector<8x768xbf16>
    %c2 = arith.constant 2 : index
    %c0_18 = arith.constant 0 : index
    %c0_19 = arith.constant 0 : index
    %36 = vector.load %arg2[%c2, %c0_18, %c0_19] : memref<9x8x8xbf16, #tpu.memory_space<vmem>>, vector<1x8x8xbf16>
    %37 = vector.shape_cast %36 : vector<1x8x8xbf16> to vector<8x8xbf16>
    %cst_20 = arith.constant dense<0.000000e+00> : vector<8x768xf32>
    %38 = tpu.matmul %37, %35, %cst_20 {dimension_numbers = #tpu.dot_dimension_numbers<[1], [0], [0], [1], [0, 0, 1, 1], [], []>} : vector<8x8xbf16>, vector<8x768xbf16>, vector<8x768xf32> -> vector<8x768xf32>
    %39 = arith.addf %34, %38 : vector<8x768xf32>
    %40 = vector.extract_strided_slice %25 {offsets = [0, 18], sizes = [8, 768], strides = [1, 1]} : vector<8x896xbf16> to vector<8x768xbf16>
    %c3 = arith.constant 3 : index
    %c0_21 = arith.constant 0 : index
    %c0_22 = arith.constant 0 : index
    %41 = vector.load %arg2[%c3, %c0_21, %c0_22] : memref<9x8x8xbf16, #tpu.memory_space<vmem>>, vector<1x8x8xbf16>
    %42 = vector.shape_cast %41 : vector<1x8x8xbf16> to vector<8x8xbf16>
    %cst_23 = arith.constant dense<0.000000e+00> : vector<8x768xf32>
    %43 = tpu.matmul %42, %40, %cst_23 {dimension_numbers = #tpu.dot_dimension_numbers<[1], [0], [0], [1], [0, 0, 1, 1], [], []>} : vector<8x8xbf16>, vector<8x768xbf16>, vector<8x768xf32> -> vector<8x768xf32>
    %44 = arith.addf %39, %43 : vector<8x768xf32>
    %45 = vector.extract_strided_slice %25 {offsets = [0, 19], sizes = [8, 768], strides = [1, 1]} : vector<8x896xbf16> to vector<8x768xbf16>
    %c4 = arith.constant 4 : index
    %c0_24 = arith.constant 0 : index
    %c0_25 = arith.constant 0 : index
    %46 = vector.load %arg2[%c4, %c0_24, %c0_25] : memref<9x8x8xbf16, #tpu.memory_space<vmem>>, vector<1x8x8xbf16>
    %47 = vector.shape_cast %46 : vector<1x8x8xbf16> to vector<8x8xbf16>
    %cst_26 = arith.constant dense<0.000000e+00> : vector<8x768xf32>
    %48 = tpu.matmul %47, %45, %cst_26 {dimension_numbers = #tpu.dot_dimension_numbers<[1], [0], [0], [1], [0, 0, 1, 1], [], []>} : vector<8x8xbf16>, vector<8x768xbf16>, vector<8x768xf32> -> vector<8x768xf32>
    %49 = arith.addf %44, %48 : vector<8x768xf32>
    %50 = vector.extract_strided_slice %25 {offsets = [0, 20], sizes = [8, 768], strides = [1, 1]} : vector<8x896xbf16> to vector<8x768xbf16>
    %c5 = arith.constant 5 : index
    %c0_27 = arith.constant 0 : index
    %c0_28 = arith.constant 0 : index
    %51 = vector.load %arg2[%c5, %c0_27, %c0_28] : memref<9x8x8xbf16, #tpu.memory_space<vmem>>, vector<1x8x8xbf16>
    %52 = vector.shape_cast %51 : vector<1x8x8xbf16> to vector<8x8xbf16>
    %cst_29 = arith.constant dense<0.000000e+00> : vector<8x768xf32>
    %53 = tpu.matmul %52, %50, %cst_29 {dimension_numbers = #tpu.dot_dimension_numbers<[1], [0], [0], [1], [0, 0, 1, 1], [], []>} : vector<8x8xbf16>, vector<8x768xbf16>, vector<8x768xf32> -> vector<8x768xf32>
    %54 = arith.addf %49, %53 : vector<8x768xf32>
    %55 = vector.extract_strided_slice %25 {offsets = [0, 36], sizes = [8, 768], strides = [1, 1]} : vector<8x896xbf16> to vector<8x768xbf16>
    %c6 = arith.constant 6 : index
    %c0_30 = arith.constant 0 : index
    %c0_31 = arith.constant 0 : index
    %56 = vector.load %arg2[%c6, %c0_30, %c0_31] : memref<9x8x8xbf16, #tpu.memory_space<vmem>>, vector<1x8x8xbf16>
    %57 = vector.shape_cast %56 : vector<1x8x8xbf16> to vector<8x8xbf16>
    %cst_32 = arith.constant dense<0.000000e+00> : vector<8x768xf32>
    %58 = tpu.matmul %57, %55, %cst_32 {dimension_numbers = #tpu.dot_dimension_numbers<[1], [0], [0], [1], [0, 0, 1, 1], [], []>} : vector<8x8xbf16>, vector<8x768xbf16>, vector<8x768xf32> -> vector<8x768xf32>
    %59 = arith.addf %54, %58 : vector<8x768xf32>
    %60 = vector.extract_strided_slice %25 {offsets = [0, 37], sizes = [8, 768], strides = [1, 1]} : vector<8x896xbf16> to vector<8x768xbf16>
    %c7 = arith.constant 7 : index
    %c0_33 = arith.constant 0 : index
    %c0_34 = arith.constant 0 : index
    %61 = vector.load %arg2[%c7, %c0_33, %c0_34] : memref<9x8x8xbf16, #tpu.memory_space<vmem>>, vector<1x8x8xbf16>
    %62 = vector.shape_cast %61 : vector<1x8x8xbf16> to vector<8x8xbf16>
    %cst_35 = arith.constant dense<0.000000e+00> : vector<8x768xf32>
    %63 = tpu.matmul %62, %60, %cst_35 {dimension_numbers = #tpu.dot_dimension_numbers<[1], [0], [0], [1], [0, 0, 1, 1], [], []>} : vector<8x8xbf16>, vector<8x768xbf16>, vector<8x768xf32> -> vector<8x768xf32>
    %64 = arith.addf %59, %63 : vector<8x768xf32>
    %65 = vector.extract_strided_slice %25 {offsets = [0, 38], sizes = [8, 768], strides = [1, 1]} : vector<8x896xbf16> to vector<8x768xbf16>
    %c8 = arith.constant 8 : index
    %c0_36 = arith.constant 0 : index
    %c0_37 = arith.constant 0 : index
    %66 = vector.load %arg2[%c8, %c0_36, %c0_37] : memref<9x8x8xbf16, #tpu.memory_space<vmem>>, vector<1x8x8xbf16>
    %67 = vector.shape_cast %66 : vector<1x8x8xbf16> to vector<8x8xbf16>
    %cst_38 = arith.constant dense<0.000000e+00> : vector<8x768xf32>
    %68 = tpu.matmul %67, %65, %cst_38 {dimension_numbers = #tpu.dot_dimension_numbers<[1], [0], [0], [1], [0, 0, 1, 1], [], []>} : vector<8x8xbf16>, vector<8x768xbf16>, vector<8x768xf32> -> vector<8x768xf32>
    %69 = arith.addf %64, %68 : vector<8x768xf32>
    %c768_i32_39 = arith.constant 768 : i32
    %70 = arith.muli %arg0, %c768_i32_39 : i32
    %71 = tpu.assume_multiple %70, 128 : i32
    %c0_40 = arith.constant 0 : index
    %72 = arith.index_cast %71 : i32 to index
    %73 = vector.load %arg5[%c0_40, %72] : memref<8x768xf32, #tpu.memory_space<vmem>>, vector<8x768xf32>
    tpu.vector_store %arg5[%c0_40, %72], %69 {strides = array<i32>} : memref<8x768xf32, #tpu.memory_space<vmem>>, vector<8x768xf32>,
    %c0_41 = arith.constant 0 : index
    %c0_42 = arith.constant 0 : index
    %74 = vector.load %arg4[%c0_41, %c0_42] : memref<1x768xf32, #tpu.memory_space<vmem>>, vector<1x768xf32>
    %75 = vector.broadcast %74 : vector<1x768xf32> to vector<8x768xf32>
    %76 = arith.mulf %69, %75 : vector<8x768xf32>
    %c0_43 = arith.constant 0 : index
    %c0_44 = arith.constant 0 : index
    %77 = vector.load %arg8[%c0_43, %c0_44] : memref<8x1xf32, #tpu.memory_space<vmem>>, vector<8x1xf32>
    %cst_45 = arith.constant dense<0.000000e+00> : vector<8xf32>
    %78 = vector.multi_reduction <add>, %76, %cst_45 [1] : vector<8x768xf32> to vector<8xf32>
    %79 = vector.shape_cast %78 : vector<8xf32> to vector<8x1xf32>
    %80 = arith.addf %77, %79 : vector<8x1xf32>
    %c0_46 = arith.constant 0 : index
    %c0_47 = arith.constant 0 : index
    %81 = vector.load %arg8[%c0_46, %c0_47] : memref<8x1xf32, #tpu.memory_space<vmem>>, vector<8x1xf32>
    tpu.vector_store %arg8[%c0_46, %c0_47], %80 {strides = array<i32>} : memref<8x1xf32, #tpu.memory_space<vmem>>, vector<8x1xf32>,
    %c0_48 = arith.constant 0 : index
    %c0_49 = arith.constant 0 : index
    %82 = vector.load %arg9[%c0_48, %c0_49] : memref<8x1xf32, #tpu.memory_space<vmem>>, vector<8x1xf32>
    %83 = arith.mulf %76, %76 : vector<8x768xf32>
    %cst_50 = arith.constant dense<0.000000e+00> : vector<8xf32>
    %84 = vector.multi_reduction <add>, %83, %cst_50 [1] : vector<8x768xf32> to vector<8xf32>
    %85 = vector.shape_cast %84 : vector<8xf32> to vector<8x1xf32>
    %86 = arith.addf %82, %85 : vector<8x1xf32>
    %c0_51 = arith.constant 0 : index
    %c0_52 = arith.constant 0 : index
    %87 = vector.load %arg9[%c0_51, %c0_52] : memref<8x1xf32, #tpu.memory_space<vmem>>, vector<8x1xf32>
    tpu.vector_store %arg9[%c0_51, %c0_52], %86 {strides = array<i32>} : memref<8x1xf32, #tpu.memory_space<vmem>>, vector<8x1xf32>,
    %c0_i32_53 = arith.constant 0 : i32
    %88 = arith.cmpi eq, %arg0, %c0_i32_53 : i32
    %89 = arith.extui %88 : i1 to i32
    %c0_i32_54 = arith.constant 0 : i32
    %90 = arith.cmpi ne, %89, %c0_i32_54 : i32
    scf.if %90 {
      %c0_55 = arith.constant 0 : index
      %c0_56 = arith.constant 0 : index
      %91 = vector.load %arg3[%c0_55, %c0_56] : memref<8x2xf32, #tpu.memory_space<vmem>>, vector<8x1xf32>
      %c0_57 = arith.constant 0 : index
      %c1_58 = arith.constant 1 : index
      %92 = vector.load %arg3[%c0_57, %c1_58] : memref<8x2xf32, #tpu.memory_space<vmem>>, vector<8x1xf32>
      %c0_59 = arith.constant 0 : index
      %c0_60 = arith.constant 0 : index
      %93 = vector.load %arg8[%c0_59, %c0_60] : memref<8x1xf32, #tpu.memory_space<vmem>>, vector<8x1xf32>
      %cst_61 = arith.constant 0.001953125 : f32
      %94 = vector.broadcast %cst_61 : f32 to vector<8x1xf32>
      %95 = arith.mulf %93, %94 : vector<8x1xf32>
      %c0_62 = arith.constant 0 : index
      %c0_63 = arith.constant 0 : index
      %96 = vector.load %arg9[%c0_62, %c0_63] : memref<8x1xf32, #tpu.memory_space<vmem>>, vector<8x1xf32>
      %cst_64 = arith.constant 0.001953125 : f32
      %97 = vector.broadcast %cst_64 : f32 to vector<8x1xf32>
      %98 = arith.mulf %96, %97 : vector<8x1xf32>
      %99 = arith.mulf %95, %95 : vector<8x1xf32>
      %100 = arith.subf %98, %99 : vector<8x1xf32>
      %cst_65 = arith.constant 0.000000e+00 : f32
      %101 = vector.broadcast %cst_65 : f32 to vector<8x1xf32>
      %102 = arith.maximumf %100, %101 : vector<8x1xf32>
      %cst_66 = arith.constant 9.99999974E-6 : f32
      %103 = vector.broadcast %cst_66 : f32 to vector<8x1xf32>
      %104 = arith.addf %102, %103 : vector<8x1xf32>
      %105 = math.rsqrt %104 : vector<8x1xf32>
      %106 = arith.mulf %91, %105 : vector<8x1xf32>
      %107 = arith.mulf %95, %106 : vector<8x1xf32>
      %108 = arith.subf %92, %107 : vector<8x1xf32>
      %c0_i32_67 = arith.constant 0 : i32
      %c768_i32_68 = arith.constant 768 : i32
      %109 = arith.muli %c0_i32_67, %c768_i32_68 : i32
      %110 = tpu.assume_multiple %109, 128 : i32
      %c0_69 = arith.constant 0 : index
      %111 = arith.index_cast %110 : i32 to index
      %112 = vector.load %arg5[%c0_69, %111] : memref<8x768xf32, #tpu.memory_space<vmem>>, vector<8x768xf32>
      %113 = vector.broadcast %106 : vector<8x1xf32> to vector<8x768xf32>
      %114 = arith.mulf %112, %113 : vector<8x768xf32>
      %115 = vector.broadcast %108 : vector<8x1xf32> to vector<8x768xf32>
      %116 = arith.addf %114, %115 : vector<8x768xf32>
      %cst_70 = arith.constant 0.000000e+00 : f32
      %117 = vector.broadcast %cst_70 : f32 to vector<8x768xf32>
      %118 = arith.maximumf %116, %117 : vector<8x768xf32>
      %c0_71 = arith.constant 0 : index
      %119 = arith.index_cast %110 : i32 to index
      %120 = vector.load %arg5[%c0_71, %119] : memref<8x768xf32, #tpu.memory_space<vmem>>, vector<8x768xf32>
      tpu.vector_store %arg5[%c0_71, %119], %118 {strides = array<i32>} : memref<8x768xf32, #tpu.memory_space<vmem>>, vector<8x768xf32>,
      %c1_i32_72 = arith.constant 1 : i32
    } else {
    }
    return
  }
  func.func @transform_1(%arg0: i32) -> (i32, i32, i32) {
    %c0_i32 = arith.constant 0 : i32
    %c0_i32_0 = arith.constant 0 : i32
    %c0_i32_1 = arith.constant 0 : i32
    %c0_i32_2 = arith.constant 0 : i32
    return %c0_i32, %c0_i32_0, %c0_i32_1 : i32, i32, i32
  }
  func.func @transform_2(%arg0: i32) -> (i32, i32) {
    %c0_i32 = arith.constant 0 : i32
    %c0_i32_0 = arith.constant 0 : i32
    %c0_i32_1 = arith.constant 0 : i32
    return %c0_i32, %c0_i32_0 : i32, i32
  }
  func.func @transform_3(%arg0: i32) -> (i32, i32) {
    %c0_i32 = arith.constant 0 : i32
    %c0_i32_0 = arith.constant 0 : i32
    return %c0_i32, %arg0 : i32, i32
  }
  func.func @transform_4(%arg0: i32) -> (i32, i32) {
    %c0_i32 = arith.constant 0 : i32
    %c0_i32_0 = arith.constant 0 : i32
    %c0_i32_1 = arith.constant 0 : i32
    return %c0_i32, %c0_i32_0 : i32, i32
  }
}

</mosaic_0001>

<bundles_post_ra>
// kernel: tpu_custom_call.1
= control target key start
LH: loop header
LB: loop body
LE: loop exit
PB: predicated region body
PF: predicated region fallthrough
CT: control target
= control target key end

     0   :  { %9 = vsyncpa [#allocation7], 0  ;;  %vm21_vm0 = vcmask 7168   ;;  %v1581_v1 = vmov 0.0   ;;  %s1941_s0 = inlined_call_operand.vmem [shape: bf16[8,896], index: 0, kind: input, shape index: {}]   ;;  %s1942_s1 = inlined_call_operand.vmem [shape: bf16[9,8,8], index: 1, kind: input, shape index: {}]   ;;  %s1943_s2 = inlined_call_operand.vmem [shape: f32[8,2], index: 2, kind: input, shape index: {}]   ;;  %s1944_s3 = inlined_call_operand.vmem [shape: f32[1,768], index: 3, kind: input, shape index: {}]   ;;  %s1945_s4 = inlined_call_operand.hbm [shape: f32[8,768], index: 4, kind: output, shape index: {}]  }
   0x1   :  { %v41_v0 = vld [vmem:[%s1941_s0] sm:$0xff]  ;;  %22 = vst.msk [vmem:[#allocation4] sm:$0xff] %vm21_vm0, %v1581_v1  ;;  %v43_v2 = vld [vmem:[%s1941_s0 + $0x8] sm:$0xff]  ;;  %v45_v3 = vld [vmem:[%s1941_s0 + $0x10] sm:$0xff] }
   0x2   :  { %23 = vst.msk [vmem:[#allocation5] sm:$0xff] %vm21_vm0, %v1581_v1  ;;  %v1465_v4 = vld [vmem:[%s1941_s0 + $0x18] sm:$0xf] }
   0x3   :  { %42 = vst [vmem:[#allocation2 + $0x10] sm:$0xff] %v41_v0 }
   0x4   :  { %44 = vst [vmem:[#allocation2] sm:$0xff] %v43_v2 }
   0x5   :  { %46 = vst [vmem:[#allocation2 + $0x18] sm:$0xff] %v45_v3 }
   0x6   :  { %58 = vst [vmem:[#allocation2 + $0x8] sm:$0xf] %v1465_v4 }
   0x7   :  { %62 = vsyncadd [#allocation3], 448 }
   0x8   :  { %1577 = dma.done.wait [#allocation3], 448 }
   0x9   :  { %1578 = vsyncadd [#allocation3], 4294966848  ;;  %s1582_s23 = smov 127   ;;  %s1583_s0 = smov 126   ;;  %vm179_vm1 = vcmask 1039360   ;;  %vm190_vm2 = vcmask 1043456  }
   0xa   :  { %v140_v6 = vld [vmem:[#allocation2 + $0x10] sm:$0xff]  ;;  %s1584_s24 = smov 110   ;;  %s1585_s25 = smov 109   ;;  %v1471_v40 = vld [vmem:[%s1942_s1 + $0x4] sm:$0xf]  ;;  %vm186_vm3 = vcmask 64512  }
   0xb   :  { %v141_v5 = vld [vmem:[#allocation2] sm:$0xff]  ;;  %v151_v8 = vunpack.c.l.b16 %v140_v6  ;;  %v152_v15 = vunpack.c.h.b16 %v140_v6  ;;  %s1586_s26 = smov 108   ;;  %s1587_s27 = smov 92   ;;  %vm402_vm4 = vcmask 1031168   ;;  %vm530_vm5 = vcmask 900096  }
   0xc   :  { %v153_v7 = vunpack.c.l.b16 %v141_v5  ;;  %v142_v9 = vld [vmem:[#allocation2 + $0x18] sm:$0xff]  ;;  %v154_v14 = vunpack.c.h.b16 %v141_v5  ;;  %s1588_s28 = smov 91   ;;  %s1589_s5 = smov 90   ;;  %v144_v58 = vld [vmem:[%s1942_s1] sm:$0xf]  ;;  %vm658_vm6 = vcmask 891904  }
   0xd   :  { %v155_v10 = vunpack.c.l.b16 %v142_v9  ;;  %v1635_v12 = vpack.c.b16 %v151_v8, %v151_v8  ;;  %v156_v16 = vunpack.c.h.b16 %v142_v9  ;;  %v1644_v18 = vpack.c.b16 %v152_v15, %v152_v15  ;;  %v143_v19 = vld [vmem:[#allocation2 + $0x8] sm:$0xf] }
   0xe   :  { %v1633_v11 = vpack.c.b16 %v153_v7, %v153_v7  ;;  %v1642_v17 = vpack.c.b16 %v154_v14, %v154_v14  ;;  %v157_v21 = vunpack.c.l.b16 %v143_v19  ;;  %v1484_v19 = vld [vmem:[%s1942_s1 + $0x8] sm:$0xf]  ;;  %vm786_vm7 = vcmask 883712  }
   0xf   :  { %v1637_v13 = vpack.c.b16 %v155_v10, %v155_v10  ;;  %165 = vrot.lane.b32.xlu0 %v1635_v12, %s1582_s23  ;;  %v1646_v20 = vpack.c.b16 %v156_v16, %v156_v16  ;;  %v291_v31 = vsel %vm190_vm2, %v1635_v12, 0  ;;  %v294_v41 = vsel %vm190_vm2, %v1644_v18, 0 }
  0x10   :  { %169 = vrot.lane.b32.xlu1 %v1633_v11, %s1582_s23  ;;  %v1651_v22 = vpack.c.b16 %v157_v21, %v157_v21  ;;  %v297_v42 = vsel %vm190_vm2, %v1633_v11, 0  ;;  %v300_v49 = vsel %vm190_vm2, %v1642_v17, 0  ;;  %vm914_vm8 = vcmask 752640  }
  0x11   :  { %173 = vrot.lane.b32.xlu2 %v1637_v13, %s1582_s23  ;;  %v303_v44 = vsel %vm190_vm2, %v1637_v13, 0  ;;  %v306_v45 = vsel %vm190_vm2, %v1646_v20, 0  ;;  %vm1042_vm9 = vcmask 744448   ;;  %vm1170_vm10 = vcmask 736256  }
  0x17   :  { %167 = vrot.lane.b32.xlu0 %v1644_v18, %s1582_s23 }
  0x18   :  { %171 = vrot.lane.b32.xlu1 %v1642_v17, %s1582_s23 }
  0x19   :  { %175 = vrot.lane.b32.xlu2 %v1646_v20, %s1582_s23 }
  0x1f   :  { %177 = vrot.lane.b32.xlu0 %v1651_v22, %s1582_s23 }
  0x20   :  { %388 = vrot.lane.b32.xlu1 %v1635_v12, %s1583_s0 }
  0x21   :  { %390 = vrot.lane.b32.xlu2 %v1644_v18, %s1583_s0 }
  0x27   :  { %392 = vrot.lane.b32.xlu0 %v1633_v11, %s1583_s0 }
  0x28   :  { %394 = vrot.lane.b32.xlu1 %v1642_v17, %s1583_s0 }
  0x29   :  { %396 = vrot.lane.b32.xlu2 %v1637_v13, %s1583_s0 }
  0x2f   :  { %398 = vrot.lane.b32.xlu0 %v1646_v20, %s1583_s0 }
  0x30   :  { %400 = vrot.lane.b32.xlu1 %v1651_v22, %s1583_s0  ;;  %s1591_s0 = smov 1  }
  0x31   :  { %516 = vrot.lane.b32.xlu2 %v1635_v12, %s1584_s24 }
  0x37   :  { %518 = vrot.lane.b32.xlu0 %v1644_v18, %s1584_s24 }
  0x38   :  { %520 = vrot.lane.b32.xlu1 %v1633_v11, %s1584_s24 }
  0x39   :  { %522 = vrot.lane.b32.xlu2 %v1642_v17, %s1584_s24 }
  0x3f   :  { %524 = vrot.lane.b32.xlu0 %v1637_v13, %s1584_s24 }
  0x40   :  { %526 = vrot.lane.b32.xlu1 %v1646_v20, %s1584_s24 }
  0x41   :  { %528 = vrot.lane.b32.xlu2 %v1651_v22, %s1584_s24 }
  0x47   :  { %644 = vrot.lane.b32.xlu0 %v1635_v12, %s1585_s25 }
  0x48   :  { %646 = vrot.lane.b32.xlu1 %v1644_v18, %s1585_s25 }
  0x49   :  { %648 = vrot.lane.b32.xlu2 %v1633_v11, %s1585_s25 }
  0x4f   :  { %650 = vrot.lane.b32.xlu0 %v1642_v17, %s1585_s25 }
  0x50   :  { %652 = vrot.lane.b32.xlu1 %v1637_v13, %s1585_s25 }
  0x51   :  { %654 = vrot.lane.b32.xlu2 %v1646_v20, %s1585_s25 }
  0x57   :  { %656 = vrot.lane.b32.xlu0 %v1651_v22, %s1585_s25 }
  0x58   :  { %772 = vrot.lane.b32.xlu1 %v1635_v12, %s1586_s26 }
  0x59   :  { %774 = vrot.lane.b32.xlu2 %v1644_v18, %s1586_s26 }
  0x5f   :  { %776 = vrot.lane.b32.xlu0 %v1633_v11, %s1586_s26 }
  0x60   :  { %778 = vrot.lane.b32.xlu1 %v1642_v17, %s1586_s26 }
  0x61   :  { %780 = vrot.lane.b32.xlu2 %v1637_v13, %s1586_s26 }
  0x67   :  { %782 = vrot.lane.b32.xlu0 %v1646_v20, %s1586_s26 }
  0x68   :  { %784 = vrot.lane.b32.xlu1 %v1651_v22, %s1586_s26 }
  0x69   :  { %900 = vrot.lane.b32.xlu2 %v1635_v12, %s1587_s27 }
  0x6b   :  { %v174_v23 = vpop.permute.xlu2 %173 }
  0x6f   :  { %902 = vrot.lane.b32.xlu0 %v1644_v18, %s1587_s27 }
  0x70   :  { %904 = vrot.lane.b32.xlu1 %v1633_v11, %s1587_s27 }
  0x71   :  { %906 = vrot.lane.b32.xlu2 %v1642_v17, %s1587_s27 }
  0x73   :  { %v176_v26 = vpop.permute.xlu2 %175 }
  0x74   :  { %v184_v27 = vsel %vm179_vm1, %v174_v23, %v176_v26 }
  0x75   :  { %v204_v30 = vsel %vm190_vm2, %v184_v27, 0 }
  0x77   :  { %908 = vrot.lane.b32.xlu0 %v1637_v13, %s1587_s27 }
  0x78   :  { %910 = vrot.lane.b32.xlu1 %v1646_v20, %s1587_s27 }
  0x79   :  { %912 = vrot.lane.b32.xlu2 %v1651_v22, %s1587_s27  ;;  %s1415_s27 = sshll.u32 %s1945_s4, 4  ;;  %s1416_s27 = int_to_ptr.hbm [resolvable:$true] %s1415_s27 }
  0x7b   :  { %v391_v43 = vpop.permute.xlu2 %390 }
  0x7f   :  { %1028 = vrot.lane.b32.xlu0 %v1635_v12, %s1588_s28 }
  0x80   :  { %1030 = vrot.lane.b32.xlu1 %v1644_v18, %s1588_s28 }
  0x81   :  { %1032 = vrot.lane.b32.xlu2 %v1633_v11, %s1588_s28  ;;  %v166_v25 = vpop.permute.xlu0 %165 }
  0x82   :  { %v170_v24 = vpop.permute.xlu1 %169 }
  0x83   :  { %v397_v51 = vpop.permute.xlu2 %396 }
  0x87   :  { %1034 = vrot.lane.b32.xlu0 %v1642_v17, %s1588_s28 }
  0x88   :  { %1036 = vrot.lane.b32.xlu1 %v1637_v13, %s1588_s28 }
  0x89   :  { %1038 = vrot.lane.b32.xlu2 %v1646_v20, %s1588_s28  ;;  %v168_v29 = vpop.permute.xlu0 %167 }
  0x8a   :  { %v172_v28 = vpop.permute.xlu1 %171  ;;  %v180_v32 = vsel %vm179_vm1, %v166_v25, %v168_v29  ;;  %v181_v33 = vsel %vm179_vm1, %v168_v29, %v170_v24 }
  0x8b   :  { %v182_v34 = vsel %vm179_vm1, %v170_v24, %v172_v28  ;;  %v183_v35 = vsel %vm179_vm1, %v172_v28, %v174_v23  ;;  %v192_v36 = vsel %vm190_vm2, %v180_v32, 0  ;;  %v195_v37 = vsel %vm190_vm2, %v181_v33, 0  ;;  %v517_v1 = vpop.permute.xlu2 %516 }
  0x8c   :  { %v198_v38 = vsel %vm190_vm2, %v182_v34, 0  ;;  %v201_v39 = vsel %vm190_vm2, %v183_v35, 0  ;;  %216 = vmatpush.bf16.msra.mxu0 %v192_v36  ;;  %229 = vmatpush.bf16.msra.mxu1 %v195_v37  ;;  %v1491_v34 = vld [vmem:[%s1942_s1 + $0xc] sm:$0xf] }
  0x8d   :  { %242 = vmatpush.bf16.msra.mxu2 %v198_v38  ;;  %255 = vmatpush.bf16.msra.mxu3 %v201_v39 }
  0x8f   :  { %1472 = vmatmul.msk.bf16.vlgmr.msra.gmra.mxu0 %vm186_vm3, %v1471_v40  ;;  %1473 = vmatmul.msk.bf16.vlgmr.msra.gmra.mxu1 %vm186_vm3, %v1471_v40 }
  0x90   :  { %268 = vmatpush.bf16.msrb.mxu0 %v204_v30  ;;  %1474 = vmatmul.msk.bf16.vlgmr.msra.gmra.mxu2 %vm186_vm3, %v1471_v40 }
  0x91   :  { %315 = vmatpush.bf16.msrb.mxu2 %v291_v31  ;;  %1475 = vmatmul.msk.bf16.vlgmr.msra.gmra.mxu3 %vm186_vm3, %v1471_v40  ;;  %v178_v46 = vpop.permute.xlu0 %177 }
  0x92   :  { %328 = vmatpush.bf16.msrb.mxu3 %v294_v41  ;;  %v389_v47 = vpop.permute.xlu1 %388  ;;  %v185_v48 = vsel %vm179_vm1, %v176_v26, %v178_v46  ;;  %1040 = vrot.lane.b32.xlu0 %v1651_v22, %s1588_s28 }
  0x93   :  { %v207_v50 = vsel %vm190_vm2, %v185_v48, 0  ;;  %1156 = vrot.lane.b32.xlu1 %v1635_v12, %s1589_s5  ;;  %1158 = vrot.lane.b32.xlu2 %v1644_v18, %s1589_s5  ;;  %v403_v54 = vsel %vm402_vm4, %v389_v47, %v391_v43  ;;  %v523_v12 = vpop.permute.xlu2 %522 }
  0x94   :  { %341 = vmatpush.bf16.msra.mxu0 %v297_v42  ;;  %281 = vmatpush.bf16.msrb.mxu1 %v207_v50  ;;  %v413_v59 = vsel %vm190_vm2, %v403_v54, 0 }
  0x95   :  { %367 = vmatpush.bf16.msra.mxu2 %v303_v44 }
  0x96   :  { %380 = vmatpush.bf16.msra.mxu3 %v306_v45 }
  0x98   :  { %354 = vmatpush.bf16.msra.mxu1 %v300_v49 }
  0x99   :  { %v393_v52 = vpop.permute.xlu0 %392 }
  0x9a   :  { %v395_v53 = vpop.permute.xlu1 %394  ;;  %v404_v55 = vsel %vm402_vm4, %v391_v43, %v393_v52  ;;  %1160 = vrot.lane.b32.xlu0 %v1633_v11, %s1589_s5 }
  0x9b   :  { %1162 = vrot.lane.b32.xlu1 %v1642_v17, %s1589_s5  ;;  %v405_v56 = vsel %vm402_vm4, %v393_v52, %v395_v53  ;;  %v406_v57 = vsel %vm402_vm4, %v395_v53, %v397_v51  ;;  %1164 = vrot.lane.b32.xlu2 %v1637_v13, %s1589_s5  ;;  %v416_v60 = vsel %vm190_vm2, %v404_v55, 0  ;;  %v529_v15 = vpop.permute.xlu2 %528 }
  0x9c   :  { %v419_v61 = vsel %vm190_vm2, %v405_v56, 0  ;;  %v422_v62 = vsel %vm190_vm2, %v406_v57, 0 }
  0x9f   :  { %1476 = vmatmul.msk.bf16.vlgmr.msrb.gmra.mxu0 %vm186_vm3, %v1471_v40  ;;  %1477 = vmatmul.msk.bf16.vlgmr.msrb.gmra.mxu1 %vm186_vm3, %v1471_v40 }
  0xa0   :  { %1478 = vmatmul.msk.bf16.vlgmr.msrb.gmra.mxu2 %vm186_vm3, %v144_v58  ;;  %437 = vmatpush.bf16.msrb.mxu0 %v413_v59  ;;  %v1498_v59 = vld [vmem:[%s1942_s1 + $0x10] sm:$0xf] }
  0xa1   :  { %1479 = vmatmul.msk.bf16.vlgmr.msrb.gmra.mxu3 %vm186_vm3, %v144_v58  ;;  %450 = vmatpush.bf16.msrb.mxu1 %v416_v60  ;;  %v399_v63 = vpop.permute.xlu0 %398 }
  0xa2   :  { %v401_v0 = vpop.permute.xlu1 %400  ;;  %463 = vmatpush.bf16.msrb.mxu2 %v419_v61  ;;  %476 = vmatpush.bf16.msrb.mxu3 %v422_v62  ;;  %v407_v4 = vsel %vm402_vm4, %v397_v51, %v399_v63 }
  0xa3   :  { %1166 = vrot.lane.b32.xlu0 %v1646_v20, %s1589_s5  ;;  %1168 = vrot.lane.b32.xlu1 %v1651_v22, %s1589_s5  ;;  %v408_v5 = vsel %vm402_vm4, %v399_v63, %v401_v0  ;;  %v425_v8 = vsel %vm190_vm2, %v407_v4, 0  ;;  %v649_v27 = vpop.permute.xlu2 %648 }
  0xa4   :  { %v428_v9 = vsel %vm190_vm2, %v408_v5, 0 }
  0xa9   :  { %v519_v3 = vpop.permute.xlu0 %518 }
  0xaa   :  { %v521_v2 = vpop.permute.xlu1 %520  ;;  %v531_v6 = vsel %vm530_vm5, %v517_v1, %v519_v3 }
  0xab   :  { %v532_v7 = vsel %vm530_vm5, %v519_v3, %v521_v2  ;;  %v541_v10 = vsel %vm190_vm2, %v531_v6, 0  ;;  %v533_v16 = vsel %vm530_vm5, %v521_v2, %v523_v12  ;;  %v655_v39 = vpop.permute.xlu2 %654 }
  0xac   :  { %v544_v11 = vsel %vm190_vm2, %v532_v7, 0  ;;  %v547_v22 = vsel %vm190_vm2, %v533_v16, 0 }
  0xaf   :  { %1480 = vmatmul.msk.bf16.vlgmr.msra.gmra.mxu0 %vm186_vm3, %v144_v58  ;;  %1481 = vmatmul.msk.bf16.vlgmr.msra.gmra.mxu1 %vm186_vm3, %v144_v58 }
  0xb0   :  { %1482 = vmatmul.msk.bf16.vlgmr.msra.gmra.mxu2 %vm186_vm3, %v144_v58  ;;  %489 = vmatpush.bf16.msra.mxu0 %v425_v8 }
  0xb1   :  { %1483 = vmatmul.msk.bf16.vlgmr.msra.gmra.mxu3 %vm186_vm3, %v144_v58  ;;  %502 = vmatpush.bf16.msra.mxu1 %v428_v9  ;;  %v525_v13 = vpop.permute.xlu0 %524 }
  0xb2   :  { %565 = vmatpush.bf16.msra.mxu2 %v541_v10  ;;  %578 = vmatpush.bf16.msra.mxu3 %v544_v11  ;;  %v527_v14 = vpop.permute.xlu1 %526  ;;  %v534_v17 = vsel %vm530_vm5, %v523_v12, %v525_v13  ;;  %v1505_v10 = vld [vmem:[%s1942_s1 + $0x14] sm:$0xf] }
  0xb3   :  { %v535_v20 = vsel %vm530_vm5, %v525_v13, %v527_v14  ;;  %v536_v21 = vsel %vm530_vm5, %v527_v14, %v529_v15  ;;  %v550_v23 = vsel %vm190_vm2, %v534_v17, 0  ;;  %v775_v42 = vpop.permute.xlu2 %774 }
  0xb4   :  { %v553_v24 = vsel %vm190_vm2, %v535_v20, 0  ;;  %v556_v25 = vsel %vm190_vm2, %v536_v21, 0 }
  0xb9   :  { %v645_v18 = vpop.permute.xlu0 %644 }
  0xba   :  { %v647_v26 = vpop.permute.xlu1 %646 }
  0xbb   :  { %v659_v30 = vsel %vm658_vm6, %v645_v18, %v647_v26  ;;  %v660_v31 = vsel %vm658_vm6, %v647_v26, %v649_v27  ;;  %v781_v53 = vpop.permute.xlu2 %780 }
  0xbc   :  { %v669_v35 = vsel %vm190_vm2, %v659_v30, 0  ;;  %v672_v36 = vsel %vm190_vm2, %v660_v31, 0 }
  0xbf   :  { %1485 = vmatmul.msk.bf16.vlgmr.msrb.gmra.mxu0 %vm186_vm3, %v1484_v19  ;;  %1486 = vmatmul.msk.bf16.vlgmr.msrb.gmra.mxu1 %vm186_vm3, %v1484_v19 }
  0xc0   :  { %1487 = vmatmul.msk.bf16.vlgmr.msrb.gmra.mxu2 %vm186_vm3, %v1484_v19  ;;  %591 = vmatpush.bf16.msrb.mxu0 %v547_v22 }
  0xc1   :  { %1488 = vmatmul.msk.bf16.vlgmr.msrb.gmra.mxu3 %vm186_vm3, %v1484_v19  ;;  %604 = vmatpush.bf16.msrb.mxu1 %v550_v23  ;;  %v651_v28 = vpop.permute.xlu0 %650 }
  0xc2   :  { %617 = vmatpush.bf16.msrb.mxu2 %v553_v24  ;;  %630 = vmatpush.bf16.msrb.mxu3 %v556_v25  ;;  %v653_v29 = vpop.permute.xlu1 %652  ;;  %v661_v32 = vsel %vm658_vm6, %v649_v27, %v651_v28 }
  0xc3   :  { %v662_v33 = vsel %vm658_vm6, %v651_v28, %v653_v29  ;;  %v675_v37 = vsel %vm190_vm2, %v661_v32, 0  ;;  %v663_v44 = vsel %vm658_vm6, %v653_v29, %v655_v39  ;;  %v901_v58 = vpop.permute.xlu2 %900 }
  0xc4   :  { %v678_v38 = vsel %vm190_vm2, %v662_v33, 0  ;;  %v681_v48 = vsel %vm190_vm2, %v663_v44, 0  ;;  %v1512_v44 = vld [vmem:[%s1942_s1 + $0x18] sm:$0xf] }
  0xc9   :  { %v657_v40 = vpop.permute.xlu0 %656 }
  0xca   :  { %v773_v41 = vpop.permute.xlu1 %772  ;;  %v664_v45 = vsel %vm658_vm6, %v655_v39, %v657_v40 }
  0xcb   :  { %v787_v46 = vsel %vm786_vm7, %v773_v41, %v775_v42  ;;  %v684_v49 = vsel %vm190_vm2, %v664_v45, 0  ;;  %v907_v4 = vpop.permute.xlu2 %906 }
  0xcc   :  { %v797_v50 = vsel %vm190_vm2, %v787_v46, 0 }
  0xcf   :  { %1489 = vmatmul.msk.bf16.vlgmr.msra.gmra.mxu0 %vm186_vm3, %v1484_v19  ;;  %1490 = vmatmul.msk.bf16.vlgmr.msra.gmra.mxu1 %vm186_vm3, %v1484_v19 }
  0xd0   :  { %1492 = vmatmul.msk.bf16.vlgmr.msra.gmra.mxu2 %vm186_vm3, %v1491_v34  ;;  %693 = vmatpush.bf16.msra.mxu0 %v669_v35 }
  0xd1   :  { %1493 = vmatmul.msk.bf16.vlgmr.msra.gmra.mxu3 %vm186_vm3, %v1491_v34  ;;  %706 = vmatpush.bf16.msra.mxu1 %v672_v36  ;;  %v777_v43 = vpop.permute.xlu0 %776 }
  0xd2   :  { %719 = vmatpush.bf16.msra.mxu2 %v675_v37  ;;  %732 = vmatpush.bf16.msra.mxu3 %v678_v38  ;;  %v788_v47 = vsel %vm786_vm7, %v775_v42, %v777_v43  ;;  %v779_v52 = vpop.permute.xlu1 %778 }
  0xd3   :  { %v800_v51 = vsel %vm190_vm2, %v788_v47, 0  ;;  %v789_v56 = vsel %vm786_vm7, %v777_v43, %v779_v52  ;;  %v790_v57 = vsel %vm786_vm7, %v779_v52, %v781_v53  ;;  %v913_v16 = vpop.permute.xlu2 %912 }
  0xd4   :  { %v803_v62 = vsel %vm190_vm2, %v789_v56, 0  ;;  %v806_v63 = vsel %vm190_vm2, %v790_v57, 0 }
  0xd9   :  { %v783_v54 = vpop.permute.xlu0 %782 }
  0xda   :  { %v785_v55 = vpop.permute.xlu1 %784  ;;  %v791_v60 = vsel %vm786_vm7, %v781_v53, %v783_v54 }
  0xdb   :  { %v792_v61 = vsel %vm786_vm7, %v783_v54, %v785_v55  ;;  %v809_v0 = vsel %vm190_vm2, %v791_v60, 0  ;;  %v1033_v18 = vpop.permute.xlu2 %1032 }
  0xdc   :  { %v812_v1 = vsel %vm190_vm2, %v792_v61, 0 }
  0xdf   :  { %1494 = vmatmul.msk.bf16.vlgmr.msrb.gmra.mxu0 %vm186_vm3, %v1491_v34  ;;  %1495 = vmatmul.msk.bf16.vlgmr.msrb.gmra.mxu1 %vm186_vm3, %v1491_v34 }
  0xe0   :  { %1496 = vmatmul.msk.bf16.vlgmr.msrb.gmra.mxu2 %vm186_vm3, %v1491_v34  ;;  %745 = vmatpush.bf16.msrb.mxu0 %v681_v48 }
  0xe1   :  { %1497 = vmatmul.msk.bf16.vlgmr.msrb.gmra.mxu3 %vm186_vm3, %v1491_v34  ;;  %758 = vmatpush.bf16.msrb.mxu1 %v684_v49  ;;  %v903_v2 = vpop.permute.xlu0 %902 }
  0xe2   :  { %821 = vmatpush.bf16.msrb.mxu2 %v797_v50  ;;  %834 = vmatpush.bf16.msrb.mxu3 %v800_v51  ;;  %v905_v3 = vpop.permute.xlu1 %904  ;;  %v915_v6 = vsel %vm914_vm8, %v901_v58, %v903_v2 }
  0xe3   :  { %v916_v7 = vsel %vm914_vm8, %v903_v2, %v905_v3  ;;  %v917_v8 = vsel %vm914_vm8, %v905_v3, %v907_v4  ;;  %v925_v11 = vsel %vm190_vm2, %v915_v6, 0  ;;  %v1039_v36 = vpop.permute.xlu2 %1038 }
  0xe4   :  { %v928_v12 = vsel %vm190_vm2, %v916_v7, 0  ;;  %v931_v13 = vsel %vm190_vm2, %v917_v8, 0  ;;  %v1519_v8 = vld [vmem:[%s1942_s1 + $0x1c] sm:$0xf] }
  0xe9   :  { %v909_v5 = vpop.permute.xlu0 %908 }
  0xea   :  { %v918_v9 = vsel %vm914_vm8, %v907_v4, %v909_v5  ;;  %v911_v15 = vpop.permute.xlu1 %910 }
  0xeb   :  { %v934_v14 = vsel %vm190_vm2, %v918_v9, 0  ;;  %v919_v20 = vsel %vm914_vm8, %v909_v5, %v911_v15  ;;  %v920_v21 = vsel %vm914_vm8, %v911_v15, %v913_v16 }
  0xec   :  { %v937_v26 = vsel %vm190_vm2, %v919_v20, 0  ;;  %v940_v27 = vsel %vm190_vm2, %v920_v21, 0 }
  0xed   :  { %v1159_v52 = vpop.permute.xlu2 %1158 }
  0xef   :  { %1499 = vmatmul.msk.bf16.vlgmr.msra.gmra.mxu0 %vm186_vm3, %v1498_v59  ;;  %1500 = vmatmul.msk.bf16.vlgmr.msra.gmra.mxu1 %vm186_vm3, %v1498_v59 }
  0xf0   :  { %1501 = vmatmul.msk.bf16.vlgmr.msra.gmra.mxu2 %vm186_vm3, %v1498_v59  ;;  %847 = vmatpush.bf16.msra.mxu0 %v803_v62 }
  0xf1   :  { %1502 = vmatmul.msk.bf16.vlgmr.msra.gmra.mxu3 %vm186_vm3, %v1498_v59  ;;  %860 = vmatpush.bf16.msra.mxu1 %v806_v63  ;;  %v1029_v17 = vpop.permute.xlu0 %1028 }
  0xf2   :  { %873 = vmatpush.bf16.msra.mxu2 %v809_v0  ;;  %886 = vmatpush.bf16.msra.mxu3 %v812_v1  ;;  %v1031_v19 = vpop.permute.xlu1 %1030 }
  0xf3   :  { %v1043_v24 = vsel %vm1042_vm9, %v1029_v17, %v1031_v19  ;;  %v1044_v25 = vsel %vm1042_vm9, %v1031_v19, %v1033_v18 }
  0xf4   :  { %v1053_v28 = vsel %vm190_vm2, %v1043_v24, 0  ;;  %v1056_v29 = vsel %vm190_vm2, %v1044_v25, 0 }
  0xf5   :  { %v1165_v61 = vpop.permute.xlu2 %1164 }
  0xf9   :  { %v1035_v30 = vpop.permute.xlu0 %1034 }
  0xfa   :  { %v1037_v35 = vpop.permute.xlu1 %1036  ;;  %v1045_v40 = vsel %vm1042_vm9, %v1033_v18, %v1035_v30 }
  0xfb   :  { %v1046_v41 = vsel %vm1042_vm9, %v1035_v30, %v1037_v35  ;;  %v1047_v45 = vsel %vm1042_vm9, %v1037_v35, %v1039_v36  ;;  %v1059_v47 = vsel %vm190_vm2, %v1045_v40, 0 }
  0xfc   :  { %v1062_v48 = vsel %vm190_vm2, %v1046_v41, 0  ;;  %v1065_v49 = vsel %vm190_vm2, %v1047_v45, 0  ;;  %v1526_v41 = vld [vmem:[%s1942_s1 + $0x20] sm:$0xf] }
  0xff   :  { %1503 = vmatmul.msk.bf16.vlgmr.msrb.gmra.mxu0 %vm186_vm3, %v1498_v59  ;;  %1504 = vmatmul.msk.bf16.vlgmr.msrb.gmra.mxu1 %vm186_vm3, %v1498_v59 }
 0x100   :  { %1506 = vmatmul.msk.bf16.vlgmr.msrb.gmra.mxu2 %vm186_vm3, %v1505_v10  ;;  %949 = vmatpush.bf16.msrb.mxu0 %v925_v11 }
 0x101   :  { %1507 = vmatmul.msk.bf16.vlgmr.msrb.gmra.mxu3 %vm186_vm3, %v1505_v10  ;;  %962 = vmatpush.bf16.msrb.mxu1 %v928_v12 }
 0x102   :  { %975 = vmatpush.bf16.msrb.mxu2 %v931_v13  ;;  %988 = vmatpush.bf16.msrb.mxu3 %v934_v14 }
 0x104   :  { %v1041_v37 = vpop.permute.xlu0 %1040 }
 0x105   :  { %v1048_v46 = vsel %vm1042_vm9, %v1039_v36, %v1041_v37  ;;  %v1157_v51 = vpop.permute.xlu1 %1156 }
 0x106   :  { %v1068_v50 = vsel %vm190_vm2, %v1048_v46, 0  ;;  %v1171_v0 = vsel %vm1170_vm10, %v1157_v51, %v1159_v52 }
 0x107   :  { %v1181_v9 = vsel %vm190_vm2, %v1171_v0, 0 }
 0x10c   :  { %v218_v22 = vpop.f32.mrf.mxu0  ;;  %v231_v23 = vpop.f32.mrf.mxu1 }
 0x10d   :  { %v1161_v59 = vpop.permute.xlu0 %1160  ;;  %v1163_v60 = vpop.permute.xlu1 %1162 }
 0x10e   :  { %v1172_v1 = vsel %vm1170_vm10, %v1159_v52, %v1161_v59  ;;  %v1173_v4 = vsel %vm1170_vm10, %v1161_v59, %v1163_v60  ;;  %v1174_v5 = vsel %vm1170_vm10, %v1163_v60, %v1165_v61 }
 0x10f   :  { %1508 = vmatmul.msk.bf16.vlgmr.msra.gmra.mxu0 %vm186_vm3, %v1505_v10  ;;  %1509 = vmatmul.msk.bf16.vlgmr.msra.gmra.mxu1 %vm186_vm3, %v1505_v10  ;;  %v1187_v11 = vsel %vm190_vm2, %v1173_v4, 0  ;;  %v1190_v12 = vsel %vm190_vm2, %v1174_v5, 0 }
 0x110   :  { %1510 = vmatmul.msk.bf16.vlgmr.msra.gmra.mxu2 %vm186_vm3, %v1505_v10  ;;  %1001 = vmatpush.bf16.msra.mxu0 %v937_v26 }
 0x111   :  { %1511 = vmatmul.msk.bf16.vlgmr.msra.gmra.mxu3 %vm186_vm3, %v1505_v10  ;;  %1014 = vmatpush.bf16.msra.mxu1 %v940_v27  ;;  %v1184_v10 = vsel %vm190_vm2, %v1172_v1, 0 }
 0x112   :  { %1077 = vmatpush.bf16.msra.mxu2 %v1053_v28  ;;  %1090 = vmatpush.bf16.msra.mxu3 %v1056_v29 }
 0x113   :  { %v244_v31 = vpop.f32.mrf.mxu2 }
 0x114   :  { %v257_v32 = vpop.f32.mrf.mxu3  ;;  %v220_v33 = vpop.f32.mrf.mxu0 }
 0x115   :  { %v233_v34 = vpop.f32.mrf.mxu1  ;;  %v1167_v19 = vpop.permute.xlu0 %1166 }
 0x116   :  { %v1169_v20 = vpop.permute.xlu1 %1168 }
 0x117   :  { %v1176_v24 = vsel %vm1170_vm10, %v1167_v19, %v1169_v20 }
 0x118   :  { %v1196_v30 = vsel %vm190_vm2, %v1176_v24, 0 }
 0x11b   :  { %v246_v38 = vpop.f32.mrf.mxu2 }
 0x11c   :  { %v259_v39 = vpop.f32.mrf.mxu3  ;;  %v270_v42 = vpop.f32.mrf.mxu0 }
 0x11d   :  { %v283_v43 = vpop.f32.mrf.mxu1 }
 0x11f   :  { %1513 = vmatmul.msk.bf16.vlgmr.msrb.gmra.mxu0 %vm186_vm3, %v1512_v44  ;;  %1514 = vmatmul.msk.bf16.vlgmr.msrb.gmra.mxu1 %vm186_vm3, %v1512_v44 }
 0x120   :  { %1515 = vmatmul.msk.bf16.vlgmr.msrb.gmra.mxu2 %vm186_vm3, %v1512_v44  ;;  %1103 = vmatpush.bf16.msrb.mxu0 %v1059_v47 }
 0x121   :  { %1516 = vmatmul.msk.bf16.vlgmr.msrb.gmra.mxu3 %vm186_vm3, %v1512_v44  ;;  %1116 = vmatpush.bf16.msrb.mxu1 %v1062_v48 }
 0x122   :  { %1129 = vmatpush.bf16.msrb.mxu2 %v1065_v49  ;;  %1142 = vmatpush.bf16.msrb.mxu3 %v1068_v50 }
 0x123   :  { %v317_v53 = vpop.f32.mrf.mxu2 }
 0x124   :  { %v330_v54 = vpop.f32.mrf.mxu3  ;;  %v318_v55 = vadd.f32 %v317_v53, %v218_v22  ;;  %v272_v57 = vpop.f32.mrf.mxu0 }
 0x125   :  { %v331_v56 = vadd.f32 %v330_v54, %v231_v23  ;;  %v285_v58 = vpop.f32.mrf.mxu1  ;;  %v1175_v23 = vsel %vm1170_vm10, %v1165_v61, %v1167_v19 }
 0x126   :  { %v1193_v29 = vsel %vm190_vm2, %v1175_v23, 0 }
 0x12b   :  { %v319_v62 = vpop.f32.mrf.mxu2 }
 0x12c   :  { %v332_v63 = vpop.f32.mrf.mxu3  ;;  %v343_v2 = vpop.f32.mrf.mxu0 }
 0x12d   :  { %v356_v3 = vpop.f32.mrf.mxu1  ;;  %v344_v6 = vadd.f32 %v343_v2, %v244_v31 }
 0x12e   :  { %v357_v7 = vadd.f32 %v356_v3, %v257_v32 }
 0x12f   :  { %1517 = vmatmul.msk.bf16.vlgmr.msra.gmra.mxu0 %vm186_vm3, %v1512_v44  ;;  %1518 = vmatmul.msk.bf16.vlgmr.msra.gmra.mxu1 %vm186_vm3, %v1512_v44 }
 0x130   :  { %1520 = vmatmul.msk.bf16.vlgmr.msra.gmra.mxu2 %vm186_vm3, %v1519_v8  ;;  %1205 = vmatpush.bf16.msra.mxu0 %v1181_v9 }
 0x131   :  { %1521 = vmatmul.msk.bf16.vlgmr.msra.gmra.mxu3 %vm186_vm3, %v1519_v8  ;;  %1218 = vmatpush.bf16.msra.mxu1 %v1184_v10 }
 0x132   :  { %1231 = vmatpush.bf16.msra.mxu2 %v1187_v11  ;;  %1244 = vmatpush.bf16.msra.mxu3 %v1190_v12 }
 0x133   :  { %v369_v13 = vpop.f32.mrf.mxu2 }
 0x134   :  { %v382_v14 = vpop.f32.mrf.mxu3  ;;  %v370_v15 = vadd.f32 %v369_v13, %v270_v42  ;;  %v345_v17 = vpop.f32.mrf.mxu0 }
 0x135   :  { %v383_v16 = vadd.f32 %v382_v14, %v283_v43  ;;  %v358_v18 = vpop.f32.mrf.mxu1 }
 0x13b   :  { %v371_v21 = vpop.f32.mrf.mxu2 }
 0x13c   :  { %v384_v22 = vpop.f32.mrf.mxu3  ;;  %v439_v25 = vpop.f32.mrf.mxu0 }
 0x13d   :  { %v452_v26 = vpop.f32.mrf.mxu1  ;;  %v508_v27 = vadd.f32 %v439_v25, %v318_v55 }
 0x13e   :  { %v509_v28 = vadd.f32 %v452_v26, %v331_v56 }
 0x13f   :  { %1522 = vmatmul.msk.bf16.vlgmr.msrb.gmra.mxu0 %vm186_vm3, %v1519_v8  ;;  %1523 = vmatmul.msk.bf16.vlgmr.msrb.gmra.mxu1 %vm186_vm3, %v1519_v8 }
 0x140   :  { %1524 = vmatmul.msk.bf16.vlgmr.msrb.gmra.mxu2 %vm186_vm3, %v1519_v8  ;;  %1257 = vmatpush.bf16.msrb.mxu0 %v1193_v29 }
 0x141   :  { %1525 = vmatmul.msk.bf16.vlgmr.msrb.gmra.mxu3 %vm186_vm3, %v1519_v8  ;;  %1270 = vmatpush.bf16.msrb.mxu1 %v1196_v30 }
 0x143   :  { %v465_v31 = vpop.f32.mrf.mxu2 }
 0x144   :  { %v478_v32 = vpop.f32.mrf.mxu3  ;;  %v510_v33 = vadd.f32 %v465_v31, %v344_v6  ;;  %v441_v35 = vpop.f32.mrf.mxu0 }
 0x145   :  { %v511_v34 = vadd.f32 %v478_v32, %v357_v7  ;;  %v454_v36 = vpop.f32.mrf.mxu1 }
 0x14b   :  { %v467_v37 = vpop.f32.mrf.mxu2 }
 0x14c   :  { %v480_v38 = vpop.f32.mrf.mxu3  ;;  %v491_v39 = vpop.f32.mrf.mxu0 }
 0x14d   :  { %v504_v40 = vpop.f32.mrf.mxu1  ;;  %v512_v42 = vadd.f32 %v491_v39, %v370_v15 }
 0x14e   :  { %v513_v43 = vadd.f32 %v504_v40, %v383_v16 }
 0x14f   :  { %1527 = vmatmul.msk.bf16.vlgmr.msra.gmra.mxu0 %vm186_vm3, %v1526_v41  ;;  %1528 = vmatmul.msk.bf16.vlgmr.msra.gmra.mxu1 %vm186_vm3, %v1526_v41 }
 0x150   :  { %1529 = vmatmul.msk.bf16.vlgmr.msra.gmra.mxu2 %vm186_vm3, %v1526_v41 }
 0x151   :  { %1530 = vmatmul.msk.bf16.vlgmr.msra.gmra.mxu3 %vm186_vm3, %v1526_v41 }
 0x153   :  { %v567_v44 = vpop.f32.mrf.mxu2 }
 0x154   :  { %v580_v45 = vpop.f32.mrf.mxu3  ;;  %v636_v46 = vadd.f32 %v567_v44, %v508_v27  ;;  %v493_v48 = vpop.f32.mrf.mxu0 }
 0x155   :  { %v637_v47 = vadd.f32 %v580_v45, %v509_v28  ;;  %v506_v49 = vpop.f32.mrf.mxu1 }
 0x15b   :  { %v569_v50 = vpop.f32.mrf.mxu2 }
 0x15c   :  { %v582_v51 = vpop.f32.mrf.mxu3  ;;  %v593_v52 = vpop.f32.mrf.mxu0 }
 0x15d   :  { %v606_v53 = vpop.f32.mrf.mxu1  ;;  %v638_v54 = vadd.f32 %v593_v52, %v510_v33 }
 0x15e   :  { %v639_v55 = vadd.f32 %v606_v53, %v511_v34 }
 0x15f   :  { %1531 = vmatmul.msk.bf16.vlgmr.msrb.gmra.mxu0 %vm186_vm3, %v1526_v41  ;;  %1532 = vmatmul.msk.bf16.vlgmr.msrb.gmra.mxu1 %vm186_vm3, %v1526_v41 }
 0x163   :  { %v619_v56 = vpop.f32.mrf.mxu2 }
 0x164   :  { %v632_v57 = vpop.f32.mrf.mxu3  ;;  %v640_v58 = vadd.f32 %v619_v56, %v512_v42  ;;  %v595_v60 = vpop.f32.mrf.mxu0 }
 0x165   :  { %v641_v59 = vadd.f32 %v632_v57, %v513_v43  ;;  %v608_v61 = vpop.f32.mrf.mxu1 }
 0x16b   :  { %v621_v62 = vpop.f32.mrf.mxu2 }
 0x16c   :  { %v634_v63 = vpop.f32.mrf.mxu3  ;;  %v695_v0 = vpop.f32.mrf.mxu0 }
 0x16d   :  { %v708_v1 = vpop.f32.mrf.mxu1  ;;  %v764_v2 = vadd.f32 %v695_v0, %v636_v46  ;;  %v1292_v63 = vld [vmem:[%s1944_s3] sm:$0x3f] }
 0x16e   :  { %v765_v3 = vadd.f32 %v708_v1, %v637_v47 }
 0x173   :  { %v721_v4 = vpop.f32.mrf.mxu2 }
 0x174   :  { %v734_v5 = vpop.f32.mrf.mxu3  ;;  %v766_v6 = vadd.f32 %v721_v4, %v638_v54  ;;  %v697_v8 = vpop.f32.mrf.mxu0  ;;  %v1294_v4 = vperm.slane %v1292_v63, 0 }
 0x175   :  { %v767_v7 = vadd.f32 %v734_v5, %v639_v55  ;;  %v710_v9 = vpop.f32.mrf.mxu1 }
 0x176   :  { %v1296_v9 = vperm.slane %v1292_v63, 2 }
 0x17b   :  { %v723_v10 = vpop.f32.mrf.mxu2 }
 0x17c   :  { %v736_v11 = vpop.f32.mrf.mxu3  ;;  %v747_v12 = vpop.f32.mrf.mxu0 }
 0x17d   :  { %v760_v13 = vpop.f32.mrf.mxu1  ;;  %v768_v14 = vadd.f32 %v747_v12, %v640_v58 }
 0x17e   :  { %v769_v15 = vadd.f32 %v760_v13, %v641_v59 }
 0x183   :  { %v823_v16 = vpop.f32.mrf.mxu2 }
 0x184   :  { %v836_v17 = vpop.f32.mrf.mxu3  ;;  %v892_v18 = vadd.f32 %v823_v16, %v764_v2  ;;  %v749_v20 = vpop.f32.mrf.mxu0 }
 0x185   :  { %v893_v19 = vadd.f32 %v836_v17, %v765_v3  ;;  %v762_v21 = vpop.f32.mrf.mxu1 }
 0x18b   :  { %v825_v22 = vpop.f32.mrf.mxu2 }
 0x18c   :  { %v838_v23 = vpop.f32.mrf.mxu3  ;;  %v849_v24 = vpop.f32.mrf.mxu0 }
 0x18d   :  { %v862_v25 = vpop.f32.mrf.mxu1  ;;  %v894_v26 = vadd.f32 %v849_v24, %v766_v6  ;;  %v1295_v6 = vperm.slane %v1292_v63, 1  ;;  %v1297_v23 = vperm.slane %v1292_v63, 3 }
 0x18e   :  { %v895_v27 = vadd.f32 %v862_v25, %v767_v7 }
 0x193   :  { %v875_v28 = vpop.f32.mrf.mxu2 }
 0x194   :  { %v888_v29 = vpop.f32.mrf.mxu3  ;;  %v896_v30 = vadd.f32 %v875_v28, %v768_v14  ;;  %v851_v32 = vpop.f32.mrf.mxu0 }
 0x195   :  { %v897_v31 = vadd.f32 %v888_v29, %v769_v15  ;;  %v864_v33 = vpop.f32.mrf.mxu1  ;;  %v1298_v29 = vperm.slane %v1292_v63, 4  ;;  %v1299_v32 = vperm.slane %v1292_v63, 5 }
 0x19b   :  { %v877_v34 = vpop.f32.mrf.mxu2 }
 0x19c   :  { %v890_v35 = vpop.f32.mrf.mxu3  ;;  %v951_v36 = vpop.f32.mrf.mxu0 }
 0x19d   :  { %v964_v37 = vpop.f32.mrf.mxu1  ;;  %v1020_v58 = vadd.f32 %v951_v36, %v892_v18 }
 0x19e   :  { %v1021_v59 = vadd.f32 %v964_v37, %v893_v19 }
 0x1a3   :  { %v977_v38 = vpop.f32.mrf.mxu2 }
 0x1a4   :  { %v990_v39 = vpop.f32.mrf.mxu3  ;;  %v953_v40 = vpop.f32.mrf.mxu0  ;;  %v1022_v7 = vadd.f32 %v977_v38, %v894_v26 }
 0x1a5   :  { %v966_v41 = vpop.f32.mrf.mxu1  ;;  %v1023_v10 = vadd.f32 %v990_v39, %v895_v27 }
 0x1ab   :  { %v979_v42 = vpop.f32.mrf.mxu2 }
 0x1ac   :  { %v992_v43 = vpop.f32.mrf.mxu3  ;;  %v1003_v44 = vpop.f32.mrf.mxu0 }
 0x1ad   :  { %v1016_v45 = vpop.f32.mrf.mxu1  ;;  %v1024_v24 = vadd.f32 %v1003_v44, %v896_v30 }
 0x1ae   :  { %v1025_v25 = vadd.f32 %v1016_v45, %v897_v31 }
 0x1b3   :  { %v1079_v46 = vpop.f32.mrf.mxu2 }
 0x1b4   :  { %v1092_v47 = vpop.f32.mrf.mxu3  ;;  %v1005_v48 = vpop.f32.mrf.mxu0  ;;  %v1148_v1 = vadd.f32 %v1079_v46, %v1020_v58 }
 0x1b5   :  { %v1018_v49 = vpop.f32.mrf.mxu1  ;;  %v1149_v2 = vadd.f32 %v1092_v47, %v1021_v59 }
 0x1bb   :  { %v1081_v50 = vpop.f32.mrf.mxu2 }
 0x1bc   :  { %v1094_v51 = vpop.f32.mrf.mxu3  ;;  %v1105_v52 = vpop.f32.mrf.mxu0 }
 0x1bd   :  { %v1118_v53 = vpop.f32.mrf.mxu1  ;;  %v1150_v8 = vadd.f32 %v1105_v52, %v1022_v7 }
 0x1be   :  { %v1151_v18 = vadd.f32 %v1118_v53, %v1023_v10 }
 0x1c3   :  { %v1131_v54 = vpop.f32.mrf.mxu2 }
 0x1c4   :  { %v1144_v55 = vpop.f32.mrf.mxu3  ;;  %v1107_v56 = vpop.f32.mrf.mxu0  ;;  %v1152_v28 = vadd.f32 %v1131_v54, %v1024_v24 }
 0x1c5   :  { %v1120_v57 = vpop.f32.mrf.mxu1  ;;  %v1153_v33 = vadd.f32 %v1144_v55, %v1025_v25  ;;  %v1312_v55 = vld [vmem:[#allocation4] sm:$0xff] }
 0x1c6   :  { %v1323_v57 = vld [vmem:[#allocation5] sm:$0xff] }
 0x1cb   :  { %v1133_v60 = vpop.f32.mrf.mxu2 }
 0x1cc   :  { %v1146_v61 = vpop.f32.mrf.mxu3  ;;  %v1207_v62 = vpop.f32.mrf.mxu0 }
 0x1cd   :  { %v1220_v0 = vpop.f32.mrf.mxu1  ;;  %v1909_v3 = vadd.f32 %v1207_v62, %v1148_v1 }
 0x1ce   :  { %v1911_v5 = vadd.f32 %v1220_v0, %v1149_v2  ;;  %v1590_v0 = vmov 0  }
 0x1cf   :  { %v1306_v11 = vmul.f32 %v1294_v4, %v1909_v3  ;;  %1548 = vset.pattern.permute.xlu1 %v1590_v0 }
 0x1d0   :  { %v1307_v12 = vmul.f32 %v1295_v6, %v1911_v5 }
 0x1d1   :  { %v1324_v20 = vmul.f32 %v1306_v11, %v1306_v11 }
 0x1d2   :  { %v1325_v21 = vmul.f32 %v1307_v12, %v1307_v12  ;;  %v1313_v26 = vadd.f32 %v1307_v12, %v1306_v11 }
 0x1d3   :  { %v1233_v13 = vpop.f32.mrf.mxu2 }
 0x1d4   :  { %v1246_v14 = vpop.f32.mrf.mxu3  ;;  %v1915_v15 = vadd.f32 %v1233_v13, %v1150_v8  ;;  %v1209_v16 = vpop.f32.mrf.mxu0  ;;  %v1330_v34 = vadd.f32 %v1325_v21, %v1324_v20  ;;  %v1342_v13 = vld [vmem:[%s1943_s2] sm:$0xff]  ;;  %s1593_s2 = smov [#allocation6]  }
 0x1d5   :  { %v1222_v17 = vpop.f32.mrf.mxu1  ;;  %v1918_v22 = vadd.f32 %v1246_v14, %v1151_v18  ;;  %s1413_s24 = sshll.u32 %s1593_s2, 4  ;;  %s1414_s24 = int_to_ptr.vmem [resolvable:$true] %s1413_s24 }
 0x1d6   :  { %v1308_v19 = vmul.f32 %v1296_v9, %v1915_v15 }
 0x1d7   :  { %v1309_v36 = vmul.f32 %v1297_v23, %v1918_v22 }
 0x1d8   :  { %v1326_v27 = vmul.f32 %v1308_v19, %v1308_v19  ;;  %v1314_v35 = vadd.f32 %v1313_v26, %v1308_v19  ;;  %v1592_v19 = vmov 1  }
 0x1d9   :  { %v1327_v31 = vmul.f32 %v1309_v36, %v1309_v36  ;;  %1550 = vset.pattern.permute.xlu0 %v1592_v19 }
 0x1da   :  { %v1331_v41 = vadd.f32 %v1330_v34, %v1326_v27  ;;  %v1315_v30 = vadd.f32 %v1314_v35, %v1309_v36 }
 0x1db   :  { %v1235_v37 = vpop.f32.mrf.mxu2 }
 0x1dc   :  { %v1248_v38 = vpop.f32.mrf.mxu3  ;;  %v1259_v39 = vpop.f32.mrf.mxu0  ;;  %v1332_v48 = vadd.f32 %v1331_v41, %v1327_v31 }
 0x1dd   :  { %v1272_v40 = vpop.f32.mrf.mxu1  ;;  %v1921_v42 = vadd.f32 %v1259_v39, %v1152_v28 }
 0x1de   :  { %v1923_v43 = vadd.f32 %v1272_v40, %v1153_v33 }
 0x1df   :  { %v1310_v44 = vmul.f32 %v1298_v29, %v1921_v42 }
 0x1e0   :  { %v1311_v45 = vmul.f32 %v1299_v32, %v1923_v43 }
 0x1e1   :  { %v1328_v46 = vmul.f32 %v1310_v44, %v1310_v44  ;;  %v1316_v47 = vadd.f32 %v1315_v30, %v1310_v44 }
 0x1e2   :  { %v1329_v50 = vmul.f32 %v1311_v45, %v1311_v45 }
 0x1e3   :  { %v1317_v49 = vadd.f32 %v1316_v47, %v1311_v45  ;;  %v1333_v51 = vadd.f32 %v1332_v48, %v1328_v46 }
 0x1e4   :  { %v1261_v52 = vpop.f32.mrf.mxu0 }
 0x1e5   :  { %v1274_v53 = vpop.f32.mrf.mxu1  ;;  %1318 = vadd.xlane.f32.xlu2 %v1317_v49  ;;  %v1334_v54 = vadd.f32 %v1333_v51, %v1329_v50 }
 0x1e7   :  { %1335 = vadd.xlane.f32.xlu0 %v1334_v54 }
 0x258   :  { %v1319_v56 = vpop.xlane.xlu2 %1318 }
 0x259   :  { %v1320_v58 = vadd.f32 %v1319_v56, %v1312_v55 }
 0x25a   :  { %v1336_v59 = vpop.xlane.xlu0 %1335 }
 0x25b   :  { %1322 = vst.msk [vmem:[#allocation4] sm:$0xff] %vm21_vm0, %v1320_v58  ;;  %v1337_v60 = vadd.f32 %v1336_v59, %v1323_v57 }
 0x25d   :  { %1338 = vst.msk [vmem:[#allocation5] sm:$0xff] %vm21_vm0, %v1337_v60 }
 0x262   :  { %v1343_v61 = vld [vmem:[#allocation4] sm:$0xff] }
 0x263   :  { %v1344_v62 = vmul.f32 0.001953125, %v1343_v61 }
 0x264   :  { %v1345_v63 = vld [vmem:[#allocation5] sm:$0xff] }
 0x265   :  { %v1346_v1 = vmul.f32 0.001953125, %v1345_v63  ;;  %v1347_v2 = vmul.f32 %v1344_v62, %v1344_v62 }
 0x267   :  { %v1348_v4 = vsub.f32 %v1346_v1, %v1347_v2 }
 0x269   :  { %v1349_v6 = vmax.f32 %v1348_v4, 0.0 }
 0x26b   :  { %v1350_v7 = vadd.f32 1e-05, %v1349_v6 }
 0x26d   :  { %1551 = vrsqrt.f32 %v1350_v7  ;;  %vm1357_vm12 = vweird.f32 %v1350_v7 }
 0x273   :  { %v1552_v8 = vpop.eup %1551 }
 0x274   :  { %v1352_v9 = vmul.f32 %v1552_v8, %v1350_v7  ;;  %vm1358_vm11 = vweird.f32 %v1552_v8 }
 0x275   :  { %vm1359_vm13 = vmor %vm1357_vm12, %vm1358_vm11 }
 0x276   :  { %v1353_v10 = vmul.f32 %v1552_v8, %v1352_v9 }
 0x278   :  { %v1354_v11 = vmul.f32 0.5, %v1353_v10 }
 0x27a   :  { %v1355_v12 = vsub.f32 1.5, %v1354_v11 }
 0x27c   :  { %v1356_v14 = vmul.f32 %v1552_v8, %v1355_v12 }
 0x27e   :  { %v1360_v16 = vsel %vm1359_vm13, %v1552_v8, %v1356_v14 }
 0x27f   :  { %v1361_v17 = vmul.f32 %v1360_v16, %v1342_v13 }
 0x281   :  { %v1362_v18 = vmul.f32 %v1361_v17, %v1344_v62 }
 0x283   :  { %1364 = vrot.lane.b32.xlu1 %v1362_v18, %s1591_s0 }
 0x28b   :  { %1376 = vperm.xlu1 %1548, %v1361_v17  }
 0x293   :  { %1549 = vset.pattern.permute.xlu1 %v1592_v19 }
 0x2f5   :  { %v1365_v20 = vpop.permute.xlu1 %1364 }
 0x2f6   :  { %v1367_v21 = vsub.f32 %v1342_v13, %v1365_v20 }
 0x2f8   :  { %1387 = vperm.xlu1 %1549, %v1367_v21  }
 0x2fd   :  { %v1377_v23 = vpop.permute.xlu1 %1376 }
 0x2fe   :  { %v1380_v24 = vmul.f32 %v1377_v23, %v1911_v5  ;;  %v1381_v25 = vmul.f32 %v1377_v23, %v1915_v15  ;;  %v1382_v26 = vmul.f32 %v1377_v23, %v1918_v22  ;;  %v1379_v27 = vmul.f32 %v1377_v23, %v1909_v3 }
 0x2ff   :  { %v1383_v28 = vmul.f32 %v1377_v23, %v1921_v42  ;;  %v1384_v29 = vmul.f32 %v1377_v23, %v1923_v43 }
 0x36a   :  { %v1388_v32 = vpop.permute.xlu1 %1387 }
 0x36b   :  { %v1390_v33 = vadd.f32 %v1388_v32, %v1379_v27  ;;  %v1391_v34 = vadd.f32 %v1388_v32, %v1380_v24  ;;  %v1392_v35 = vadd.f32 %v1388_v32, %v1381_v25  ;;  %v1393_v36 = vadd.f32 %v1388_v32, %v1382_v26 }
 0x36c   :  { %v1394_v37 = vadd.f32 %v1388_v32, %v1383_v28  ;;  %v1395_v38 = vadd.f32 %v1388_v32, %v1384_v29 }
 0x36d   :  { %v1396_v39 = vmax.f32 %v1390_v33, 0.0  ;;  %v1397_v40 = vmax.f32 %v1391_v34, 0.0  ;;  %v1398_v5 = vmax.f32 %v1392_v35, 0.0  ;;  %v1399_v41 = vmax.f32 %v1393_v36, 0.0 }
 0x36e   :  { %v1400_v15 = vmax.f32 %v1394_v37, 0.0  ;;  %v1401_v3 = vmax.f32 %v1395_v38, 0.0 }
 0x36f   :  { %1402 = vst [vmem:[#allocation6] sm:$0xff] %v1396_v39 }
 0x370   :  { %1403 = vst [vmem:[#allocation6 + $0x8] sm:$0xff] %v1397_v40 }
 0x371   :  { %1404 = vst [vmem:[#allocation6 + $0x10] sm:$0xff] %v1398_v5 }
 0x372   :  { %1405 = vst [vmem:[#allocation6 + $0x18] sm:$0xff] %v1399_v41 }
 0x373   :  { %1406 = vst [vmem:[#allocation6 + $0x20] sm:$0xff] %v1400_v15 }
 0x374   :  { %1407 = vst [vmem:[#allocation6 + $0x28] sm:$0xff] %v1401_v3 }
 0x375   :  { %1418 = dma.vmem_to_hbm [thread:$0]  %s1414_s24, 768, %s1416_s27, [#allocation7]  }
 0x376   :  { %1579 = dma.done.wait [#allocation7], 768  }
 0x377   :  { %1580 = vsyncadd [#allocation7], 4294966528 }
 0x378   :  { %1423 = vsyncpa [#allocation7], 1 }
 0x379   :  { %1424 = vsyncmov [#allocation3] }
 0x37c   :  { %s1425_s28 = vpop.sfrf %1424 }
 0x37d   :  { %p1533_p0 = scmp.ne.s32.totalorder %s1425_s28, 0 }
 0x37f   :  { %1429 = shalt.err (%p1533_p0)  }
 0x380   :  { %1431 = vsyncmov [#allocation3 + $0x1] }
 0x383   :  { %s1432_s29 = vpop.sfrf %1431 }
 0x384   :  { %p1534_p1 = scmp.ne.s32.totalorder %s1432_s29, 0 }
 0x386   :  { %1436 = shalt.err (%p1534_p1)  }

</bundles_post_ra>
